<compile_context>
chip_gen: v7x
topology: tpu7x:2x2x1
jax: 0.10.0
libtpu: 0.0.40
codegen_flags: <defaults>
</compile_context>

<pallas_src>
import jax
import jax.numpy as jnp
from jax import lax
from jax.experimental import pallas as pl
from jax.experimental.pallas import tpu as pltpu

N, C_IN, H, W = 2, 128, 6, 7
HW = H * W                       # 42
CV, CP = 3, 32                   # value-head / policy-head conv channels
NC = CV + CP                     # 35 packed conv channels: [value(3) | policy(32)]
FC1_OUT = 32
POLICY_OUT = 7
FUSED_OUT = FC1_OUT + POLICY_OUT  # 39 fused FC columns: [fc1(value,32) | policy(7)]
PACK = POLICY_OUT + 1            # packed output width: [policy(7) | value(1)]
EPS = 1e-5
MAX_TILE = 128                   # batch tile cap (VMEM-safe on v5e/v6e/v7x)


# ---------------------------------------------------------------------------
# Fused kernel: one grid step processes a tile of `tb` samples end-to-end.
#   x_ref    : (42, tb, 128) bf16   input in (HW, batch, C_in) layout
#   wct_ref  : (128, 35)     bf16   folded-BN 1x1 conv weights (transposed)
#   bc_ref   : (1, 35)       f32    folded-BN conv bias
#   wall_ref : (42, 35, 39)  bf16   fused FC weights [h, conv_ch, out]
#   b1_ref   : (1, 32) f32,  w2_ref: (1, 32) f32,  b2_ref: (1, 1) f32
#   bfc_ref  : (1, 7)  f32
#   out_ref  : (tb, 8)       f32    [:, :7]=policy probs, [:, 7]=value
# ---------------------------------------------------------------------------
def output_block_kernel(x_ref, wct_ref, bc_ref, wall_ref, b1_ref, w2_ref,
                        b2_ref, bfc_ref, out_ref):
    hw, tb, cin = x_ref.shape

    # --- 1x1 conv (both heads packed) + folded BN + ReLU: one tile-wide MXU matmul.
    x2 = x_ref[...].reshape(hw * tb, cin)                       # aligned merge (tb % 8 == 0)
    y = jnp.dot(x2, wct_ref[...], preferred_element_type=jnp.float32)   # (hw*tb, 35) f32
    y = jnp.maximum(y + bc_ref[...], 0.0)                       # f32 elementwise (v5e-safe)
    yb = y.astype(jnp.bfloat16).reshape(hw, tb, NC)             # aligned split

    # --- both FC heads fused: per-h MXU contraction over conv channels,
    #     then a cheap VPU reduction over h.  sfc[:, :32]=fc1(value), [:, 32:39]=policy logits.
    t = lax.dot_general(yb, wall_ref[...],
                        dimension_numbers=(((2,), (1,)), ((0,), (0,))),
                        preferred_element_type=jnp.float32)     # (hw, tb, 39) f32
    sfc = jnp.sum(t, axis=0)                                    # (tb, 39)

    # value head: relu(fc1) -> fc2 (32-lane multiply-reduce) -> tanh (EUP)
    h1 = jnp.maximum(sfc[:, 0:FC1_OUT] + b1_ref[...], 0.0)      # (tb, 32)
    v = jnp.tanh(jnp.sum(h1 * w2_ref[...], axis=-1, keepdims=True) + b2_ref[...])  # (tb, 1)

    # policy head: direct softmax (exp on EUP, approx reciprocal on EUP)
    logits = sfc[:, FC1_OUT:FUSED_OUT] + bfc_ref[...]           # (tb, 7)
    m = jnp.max(logits, axis=-1, keepdims=True)
    e = jnp.exp(logits - m)
    p = e * pl.reciprocal(jnp.sum(e, axis=-1, keepdims=True), approx=True)

    # one lane-dense store per tile: [policy(7) | value(1)]
    out_ref[...] = jnp.concatenate([p, v], axis=-1)


def _pick_batch_tile(n_pad, max_tile=MAX_TILE):
    """Largest multiple-of-8 tile dividing n_pad (<= max_tile), preferring >=2 grid
    steps so both v7x TensorCores get work under dimension_semantics=('parallel',)."""
    cands = [d for d in range(8, min(n_pad, max_tile) + 1, 8) if n_pad % d == 0]
    if not cands:
        return n_pad
    multi = [d for d in cands if n_pad // d >= 2]
    return max(multi) if multi else max(cands)


@jax.jit
def output_block_forward(s, params):
    """s: (N, 128, 6, 7) float32 NCHW.  Returns (p, v) = ((N, 7), (N, 1))."""
    n = s.shape[0]
    n_pad = -(-n // 8) * 8                       # pad batch to a multiple of 8

    # Layout plumbing (one fused XLA transpose+pad+cast): NCHW f32 -> (HW, n_pad, C_IN) bf16.
    x = jnp.transpose(s.reshape(n, C_IN, HW), (2, 0, 1))
    if n_pad != n:
        x = jnp.pad(x, ((0, 0), (0, n_pad - n), (0, 0)))
    x = x.astype(jnp.bfloat16)

    tb = _pick_batch_tile(n_pad)
    grid = (n_pad // tb,)

    flops = n_pad * (2 * C_IN * NC * HW           # conv
                     + 2 * HW * NC * FUSED_OUT    # fused fc1 + policy fc
                     + 2 * FC1_OUT)               # fc2
    bytes_accessed = (2 * n_pad * C_IN * HW       # x (bf16)
                      + 2 * C_IN * NC + 2 * HW * NC * FUSED_OUT
                      + 4 * (NC + 2 * FC1_OUT + 1 + POLICY_OUT)
                      + 4 * n_pad * PACK)

    packed = pl.pallas_call(
        output_block_kernel,
        out_shape=jax.ShapeDtypeStruct((n_pad, PACK), jnp.float32),
        grid_spec=pltpu.PrefetchScalarGridSpec(
            num_scalar_prefetch=0,
            grid=grid,
            in_specs=[
                pl.BlockSpec((HW, tb, C_IN), lambda i: (0, i, 0)),
                pl.BlockSpec((C_IN, NC), lambda i: (0, 0)),
                pl.BlockSpec((1, NC), lambda i: (0, 0)),
                pl.BlockSpec((HW, NC, FUSED_OUT), lambda i: (0, 0, 0)),
                pl.BlockSpec((1, FC1_OUT), lambda i: (0, 0)),
                pl.BlockSpec((1, FC1_OUT), lambda i: (0, 0)),
                pl.BlockSpec((1, 1), lambda i: (0, 0)),
                pl.BlockSpec((1, POLICY_OUT), lambda i: (0, 0)),
            ],
            out_specs=pl.BlockSpec((tb, PACK), lambda i: (i, 0)),
        ),
        compiler_params=pltpu.CompilerParams(
            dimension_semantics=("parallel",),
            vmem_limit_bytes=48 * 1024 * 1024),
        cost_estimate=pl.CostEstimate(
            flops=flops,
            transcendentals=n_pad * (POLICY_OUT + 2),
            bytes_accessed=bytes_accessed),
    )(x, params["wct"], params["bc"], params["wall"], params["b1"],
      params["w2"], params["b2"], params["bfc"])

    p = packed[:n, 0:POLICY_OUT]
    v = packed[:n, POLICY_OUT:PACK]
    return p, v


# ---------------------------------------------------------------------------
# Deterministic parameter construction + offline BN folding / FC weight packing.
# ---------------------------------------------------------------------------
def make_params(key):
    ks = jax.random.split(key, 16)

    def rnd(k, shape, scale=0.05):
        return scale * jax.random.normal(k, shape, dtype=jnp.float32)

    # conv (128->3), conv1 (128->32): torch layout (C_out, C_in)
    conv_w, conv_b = rnd(ks[0], (CV, C_IN)), rnd(ks[1], (CV,))
    conv1_w, conv1_b = rnd(ks[2], (CP, C_IN)), rnd(ks[3], (CP,))

    # BatchNorm (eval-mode running stats)
    bn_g = 1.0 + 0.1 * jax.random.normal(ks[4], (CV,), jnp.float32)
    bn_b, bn_m = rnd(ks[5], (CV,)), rnd(ks[6], (CV,))
    bn_v = 1.0 + 0.1 * jnp.abs(jax.random.normal(ks[7], (CV,), jnp.float32))
    bn1_g = 1.0 + 0.1 * jax.random.normal(ks[8], (CP,), jnp.float32)
    bn1_b, bn1_m = rnd(ks[9], (CP,)), rnd(ks[10], (CP,))
    bn1_v = 1.0 + 0.1 * jnp.abs(jax.random.normal(ks[11], (CP,), jnp.float32))

    # FC layers: torch layout (out, in), in-index = c*42 + hw (channel-major flatten)
    fc1_w, fc1_b = rnd(ks[12], (FC1_OUT, CV * HW)), rnd(ks[13], (FC1_OUT,))
    fc2_w = rnd(ks[14], (1, FC1_OUT))
    fc2_b = 0.01 * jnp.ones((1,), jnp.float32)
    fc_w = rnd(ks[15], (POLICY_OUT, CP * HW))
    fc_b = 0.01 * jnp.ones((POLICY_OUT,), jnp.float32)

    # ---- fold eval-mode BN into the 1x1 convs; pack [value(3) | policy(32)] rows ----
    sv = bn_g / jnp.sqrt(bn_v + EPS)
    sp = bn1_g / jnp.sqrt(bn1_v + EPS)
    wc = jnp.concatenate([conv_w * sv[:, None], conv1_w * sp[:, None]], axis=0)  # (35, 128)
    bc = jnp.concatenate([sv * (conv_b - bn_m) + bn_b,
                          sp * (conv1_b - bn1_m) + bn1_b])                        # (35,)

    # ---- fused FC weight (HW, NC, 39): block-structured over conv channels ---------
    #   wall[h, c, o]      = fc1_w[o, c*42 + h]           for c in value channels
    #   wall[h, 3+c, 32+o] = fc_w[o, c*42 + h]            for c in policy channels
    w1_r = fc1_w.reshape(FC1_OUT, CV, HW)       # [o, c, h]
    wfc_r = fc_w.reshape(POLICY_OUT, CP, HW)    # [o, c, h]
    wall = jnp.zeros((HW, NC, FUSED_OUT), jnp.float32)
    wall = wall.at[:, 0:CV, 0:FC1_OUT].set(jnp.transpose(w1_r, (2, 1, 0)))
    wall = wall.at[:, CV:NC, FC1_OUT:FUSED_OUT].set(jnp.transpose(wfc_r, (2, 1, 0)))

    params = dict(
        wct=wc.T.astype(jnp.bfloat16),          # (128, 35) bf16 MXU operand
        bc=bc[None, :],                         # (1, 35)  f32
        wall=wall.astype(jnp.bfloat16),         # (42, 35, 39) bf16 MXU operand
        b1=fc1_b[None, :],                      # (1, 32)
        w2=fc2_w,                               # (1, 32)
        b2=fc2_b[None, :],                      # (1, 1)
        bfc=fc_b[None, :],                      # (1, 7)
    )
    torch_like = dict(conv_w=conv_w, conv_b=conv_b, conv1_w=conv1_w, conv1_b=conv1_b,
                      bn=(bn_g, bn_b, bn_m, bn_v), bn1=(bn1_g, bn1_b, bn1_m, bn1_v),
                      fc1_w=fc1_w, fc1_b=fc1_b, fc2_w=fc2_w, fc2_b=fc2_b,
                      fc_w=fc_w, fc_b=fc_b)
    return params, torch_like


def reference_forward(s, t):
    """Plain-JAX mirror of the PyTorch forward (eval-mode BN, full f32 precision)."""
    P = lax.Precision.HIGHEST

    def bn(y, g, b, m, v):
        inv = g / jnp.sqrt(v + EPS)
        return (y - m[None, :, None, None]) * inv[None, :, None, None] \
            + b[None, :, None, None]

    yv = jnp.einsum('nihw,oi->nohw', s, t["conv_w"], precision=P) \
        + t["conv_b"][None, :, None, None]
    yv = jax.nn.relu(bn(yv, *t["bn"])).reshape(s.shape[0], CV * HW)
    hv = jax.nn.relu(jnp.dot(yv, t["fc1_w"].T, precision=P) + t["fc1_b"])
    v = jnp.tanh(jnp.dot(hv, t["fc2_w"].T, precision=P) + t["fc2_b"])

    yp = jnp.einsum('nihw,oi->nohw', s, t["conv1_w"], precision=P) \
        + t["conv1_b"][None, :, None, None]
    yp = jax.nn.relu(bn(yp, *t["bn1"])).reshape(s.shape[0], CP * HW)
    logits = jnp.dot(yp, t["fc_w"].T, precision=P) + t["fc_b"]
    p = jnp.exp(jax.nn.log_softmax(logits, axis=1))
    return p, v


if __name__ == "__main__":
    key = jax.random.PRNGKey(0)
    k_x, k_p = jax.random.split(key)
    s = jax.random.normal(k_x, (N, C_IN, H, W), dtype=jnp.float32)
    params, torch_like = make_params(k_p)

    p, v = jax.block_until_ready(output_block_forward(s, params))

    p_ref, v_ref = reference_forward(s, torch_like)
    assert p.shape == (N, POLICY_OUT) and v.shape == (N, 1)
    # bf16 MXU operands (f32 accumulation) vs. the full-f32 reference: loosened tolerance.
    assert jnp.allclose(p, p_ref, rtol=5e-2, atol=5e-3), "policy mismatch"
    assert jnp.allclose(v, v_ref, rtol=5e-2, atol=5e-3), "value mismatch"
    assert jnp.allclose(jnp.sum(p, axis=1), 1.0, atol=5e-3), "policy rows must sum to 1"

    print("KERNEL_OK")
</pallas_src>

<mosaic_0001>
module attributes {stable_mosaic.version = 11 : i64} {
  func.func @output_block_kernel(%arg0: i32, %arg1: memref<42x8x128xbf16, #tpu.memory_space<vmem>>, %arg2: memref<128x35xbf16, #tpu.memory_space<vmem>>, %arg3: memref<1x35xf32, #tpu.memory_space<vmem>>, %arg4: memref<42x35x39xbf16, #tpu.memory_space<vmem>>, %arg5: memref<1x32xf32, #tpu.memory_space<vmem>>, %arg6: memref<1x32xf32, #tpu.memory_space<vmem>>, %arg7: memref<1x1xf32, #tpu.memory_space<vmem>>, %arg8: memref<1x7xf32, #tpu.memory_space<vmem>>, %arg9: memref<8x8xf32, #tpu.memory_space<vmem>>) attributes {dimension_semantics = [#tpu.dimension_semantics<parallel>], iteration_bounds = array<i64: 1>, scalar_prefetch = 0 : i64, scratch_operands = 0 : i64, tpu.core_type = #tpu.core_type<tc>, window_params = [{transform_indices = @transform_0, window_bounds = array<i64: 42, 8, 128>}, {pipeline_mode = #tpu.pipeline_mode<synchronous>, transform_indices = @transform_1, window_bounds = array<i64: 128, 35>}, {pipeline_mode = #tpu.pipeline_mode<synchronous>, transform_indices = @transform_2, window_bounds = array<i64: 1, 35>}, {pipeline_mode = #tpu.pipeline_mode<synchronous>, transform_indices = @transform_3, window_bounds = array<i64: 42, 35, 39>}, {pipeline_mode = #tpu.pipeline_mode<synchronous>, transform_indices = @transform_4, window_bounds = array<i64: 1, 32>}, {pipeline_mode = #tpu.pipeline_mode<synchronous>, transform_indices = @transform_5, window_bounds = array<i64: 1, 32>}, {pipeline_mode = #tpu.pipeline_mode<synchronous>, transform_indices = @transform_6, window_bounds = array<i64: 1, 1>}, {pipeline_mode = #tpu.pipeline_mode<synchronous>, transform_indices = @transform_7, window_bounds = array<i64: 1, 7>}, {transform_indices = @transform_8, window_bounds = array<i64: 8, 8>}]} {
    %c0 = arith.constant 0 : index
    %c0_0 = arith.constant 0 : index
    %c0_1 = arith.constant 0 : index
    %0 = vector.load %arg1[%c0, %c0_0, %c0_1] : memref<42x8x128xbf16, #tpu.memory_space<vmem>>, vector<42x8x128xbf16>
    %1 = vector.shape_cast %0 : vector<42x8x128xbf16> to vector<336x128xbf16>
    %c0_2 = arith.constant 0 : index
    %c0_3 = arith.constant 0 : index
    %2 = vector.load %arg2[%c0_2, %c0_3] : memref<128x35xbf16, #tpu.memory_space<vmem>>, vector<128x35xbf16>
    %cst = arith.constant dense<0.000000e+00> : vector<336x35xf32>
    %3 = tpu.matmul %1, %2, %cst {dimension_numbers = #tpu.dot_dimension_numbers<[1], [0], [0], [1], [0, 0, 1, 1], [], []>} : vector<336x128xbf16>, vector<128x35xbf16>, vector<336x35xf32> -> vector<336x35xf32>
    %c0_4 = arith.constant 0 : index
    %c0_5 = arith.constant 0 : index
    %4 = vector.load %arg3[%c0_4, %c0_5] : memref<1x35xf32, #tpu.memory_space<vmem>>, vector<1x35xf32>
    %5 = vector.broadcast %4 : vector<1x35xf32> to vector<336x35xf32>
    %6 = arith.addf %3, %5 : vector<336x35xf32>
    %cst_6 = arith.constant 0.000000e+00 : f32
    %7 = vector.broadcast %cst_6 : f32 to vector<336x35xf32>
    %8 = arith.maximumf %6, %7 : vector<336x35xf32>
    %9 = arith.truncf %8 : vector<336x35xf32> to vector<336x35xbf16>
    %10 = vector.shape_cast %9 : vector<336x35xbf16> to vector<42x8x35xbf16>
    %c0_7 = arith.constant 0 : index
    %c0_8 = arith.constant 0 : index
    %c0_9 = arith.constant 0 : index
    %11 = vector.load %arg4[%c0_7, %c0_8, %c0_9] : memref<42x35x39xbf16, #tpu.memory_space<vmem>>, vector<42x35x39xbf16>
    %cst_10 = arith.constant dense<0.000000e+00> : vector<42x8x39xf32>
    %12 = tpu.matmul %10, %11, %cst_10 {dimension_numbers = #tpu.dot_dimension_numbers<[2], [1], [1], [2], [0, 0, 0, 1, 1, 2], [0], [0]>} : vector<42x8x35xbf16>, vector<42x35x39xbf16>, vector<42x8x39xf32> -> vector<42x8x39xf32>
    %cst_11 = arith.constant dense<0.000000e+00> : vector<8x39xf32>
    %13 = vector.multi_reduction <add>, %12, %cst_11 [0] : vector<42x8x39xf32> to vector<8x39xf32>
    %14 = vector.extract_strided_slice %13 {offsets = [0, 0], sizes = [8, 32], strides = [1, 1]} : vector<8x39xf32> to vector<8x32xf32>
    %c0_12 = arith.constant 0 : index
    %c0_13 = arith.constant 0 : index
    %15 = vector.load %arg5[%c0_12, %c0_13] : memref<1x32xf32, #tpu.memory_space<vmem>>, vector<1x32xf32>
    %16 = vector.broadcast %15 : vector<1x32xf32> to vector<8x32xf32>
    %17 = arith.addf %14, %16 : vector<8x32xf32>
    %cst_14 = arith.constant 0.000000e+00 : f32
    %18 = vector.broadcast %cst_14 : f32 to vector<8x32xf32>
    %19 = arith.maximumf %17, %18 : vector<8x32xf32>
    %c0_15 = arith.constant 0 : index
    %c0_16 = arith.constant 0 : index
    %20 = vector.load %arg6[%c0_15, %c0_16] : memref<1x32xf32, #tpu.memory_space<vmem>>, vector<1x32xf32>
    %21 = vector.broadcast %20 : vector<1x32xf32> to vector<8x32xf32>
    %22 = arith.mulf %19, %21 : vector<8x32xf32>
    %cst_17 = arith.constant dense<0.000000e+00> : vector<8xf32>
    %23 = vector.multi_reduction <add>, %22, %cst_17 [1] : vector<8x32xf32> to vector<8xf32>
    %24 = vector.shape_cast %23 : vector<8xf32> to vector<8x1xf32>
    %c0_18 = arith.constant 0 : index
    %c0_19 = arith.constant 0 : index
    %25 = vector.load %arg7[%c0_18, %c0_19] : memref<1x1xf32, #tpu.memory_space<vmem>>, vector<1x1xf32>
    %26 = vector.broadcast %25 : vector<1x1xf32> to vector<8x1xf32>
    %27 = arith.addf %24, %26 : vector<8x1xf32>
    %28 = math.tanh %27 : vector<8x1xf32>
    %29 = vector.extract_strided_slice %13 {offsets = [0, 32], sizes = [8, 7], strides = [1, 1]} : vector<8x39xf32> to vector<8x7xf32>
    %c0_20 = arith.constant 0 : index
    %c0_21 = arith.constant 0 : index
    %30 = vector.load %arg8[%c0_20, %c0_21] : memref<1x7xf32, #tpu.memory_space<vmem>>, vector<1x7xf32>
    %31 = vector.broadcast %30 : vector<1x7xf32> to vector<8x7xf32>
    %32 = arith.addf %29, %31 : vector<8x7xf32>
    %cst_22 = arith.constant dense<0xFF800000> : vector<8xf32>
    %33 = vector.multi_reduction <maximumf>, %32, %cst_22 [1] : vector<8x7xf32> to vector<8xf32>
    %34 = vector.shape_cast %33 : vector<8xf32> to vector<8x1xf32>
    %35 = vector.broadcast %34 : vector<8x1xf32> to vector<8x7xf32>
    %36 = arith.subf %32, %35 : vector<8x7xf32>
    %37 = math.exp %36 : vector<8x7xf32>
    %cst_23 = arith.constant dense<0.000000e+00> : vector<8xf32>
    %38 = vector.multi_reduction <add>, %37, %cst_23 [1] : vector<8x7xf32> to vector<8xf32>
    %39 = vector.shape_cast %38 : vector<8xf32> to vector<8x1xf32>
    %40 = tpu.reciprocal %39 {approx = true} : vector<8x1xf32> -> vector<8x1xf32>
    %41 = vector.broadcast %40 : vector<8x1xf32> to vector<8x7xf32>
    %42 = arith.mulf %37, %41 : vector<8x7xf32>
    %43 = tpu.concatenate %42, %28 in 1 : vector<8x7xf32>, vector<8x1xf32> -> vector<8x8xf32>
    %c0_24 = arith.constant 0 : index
    %c0_25 = arith.constant 0 : index
    %44 = vector.load %arg9[%c0_24, %c0_25] : memref<8x8xf32, #tpu.memory_space<vmem>>, vector<8x8xf32>
    tpu.vector_store %arg9[%c0_24, %c0_25], %43 {strides = array<i32>} : memref<8x8xf32, #tpu.memory_space<vmem>>, vector<8x8xf32>,
    return
  }
  func.func @transform_0(%arg0: i32) -> (i32, i32, i32) {
    %c0_i32 = arith.constant 0 : i32
    %c0_i32_0 = arith.constant 0 : i32
    %c0_i32_1 = arith.constant 0 : i32
    return %c0_i32, %arg0, %c0_i32_0 : i32, i32, i32
  }
  func.func @transform_1(%arg0: i32) -> (i32, i32) {
    %c0_i32 = arith.constant 0 : i32
    %c0_i32_0 = arith.constant 0 : i32
    %c0_i32_1 = arith.constant 0 : i32
    return %c0_i32, %c0_i32_0 : i32, i32
  }
  func.func @transform_2(%arg0: i32) -> (i32, i32) {
    %c0_i32 = arith.constant 0 : i32
    %c0_i32_0 = arith.constant 0 : i32
    %c0_i32_1 = arith.constant 0 : i32
    return %c0_i32, %c0_i32_0 : i32, i32
  }
  func.func @transform_3(%arg0: i32) -> (i32, i32, i32) {
    %c0_i32 = arith.constant 0 : i32
    %c0_i32_0 = arith.constant 0 : i32
    %c0_i32_1 = arith.constant 0 : i32
    %c0_i32_2 = arith.constant 0 : i32
    return %c0_i32, %c0_i32_0, %c0_i32_1 : i32, i32, i32
  }
  func.func @transform_4(%arg0: i32) -> (i32, i32) {
    %c0_i32 = arith.constant 0 : i32
    %c0_i32_0 = arith.constant 0 : i32
    %c0_i32_1 = arith.constant 0 : i32
    return %c0_i32, %c0_i32_0 : i32, i32
  }
  func.func @transform_5(%arg0: i32) -> (i32, i32) {
    %c0_i32 = arith.constant 0 : i32
    %c0_i32_0 = arith.constant 0 : i32
    %c0_i32_1 = arith.constant 0 : i32
    return %c0_i32, %c0_i32_0 : i32, i32
  }
  func.func @transform_6(%arg0: i32) -> (i32, i32) {
    %c0_i32 = arith.constant 0 : i32
    %c0_i32_0 = arith.constant 0 : i32
    %c0_i32_1 = arith.constant 0 : i32
    return %c0_i32, %c0_i32_0 : i32, i32
  }
  func.func @transform_7(%arg0: i32) -> (i32, i32) {
    %c0_i32 = arith.constant 0 : i32
    %c0_i32_0 = arith.constant 0 : i32
    %c0_i32_1 = arith.constant 0 : i32
    return %c0_i32, %c0_i32_0 : i32, i32
  }
  func.func @transform_8(%arg0: i32) -> (i32, i32) {
    %c0_i32 = arith.constant 0 : i32
    %c0_i32_0 = arith.constant 0 : i32
    return %arg0, %c0_i32 : i32, i32
  }
}

</mosaic_0001>

<bundles_post_ra>
// kernel: output_block_forward.1
= control target key start
LH: loop header
LB: loop body
LE: loop exit
PB: predicated region body
PF: predicated region fallthrough
CT: control target
= control target key end

     0   :  { %v4744_v0 = vmov 0.0   ;;  %vm4745_vm0 = vmmov 0   ;;  %vm869_vm1 = vcmask 1040384   ;;  %vm870_vm2 = vcmask 1041408   ;;  %s4747_s20 = smov 32   ;;  %s4748_s9 = smov 96   ;;  %s5828_s1 = inlined_call_operand.vmem [shape: bf16[128,35], index: 1, kind: input, shape index: {}]   ;;  %s5829_s0 = inlined_call_operand.vmem [shape: bf16[42,8,128], index: 0, kind: input, shape index: {}]   ;;  %s5830_s3 = inlined_call_operand.vmem [shape: bf16[42,35,39], index: 3, kind: input, shape index: {}]   ;;  %s5831_s2 = inlined_call_operand.vmem [shape: f32[1,35], index: 2, kind: input, shape index: {}]   ;;  %s5832_s7 = inlined_call_operand.vmem [shape: f32[1,7], index: 7, kind: input, shape index: {}]   ;;  %s5833_s6 = inlined_call_operand.<no memory space> [shape: f32[1,1], index: 6, kind: input, shape index: {}]   ;;  %s5834_s4 = inlined_call_operand.vmem [shape: f32[1,32], index: 4, kind: input, shape index: {}]   ;;  %s5835_s5 = inlined_call_operand.vmem [shape: f32[1,32], index: 5, kind: input, shape index: {}]   ;;  %s5836_s8 = inlined_call_operand.vmem [shape: f32[8,8], index: 8, kind: output, shape index: {}]  }
   0x1   :  { %4056 = vmatprep.subr.bf16.mxu0 %v4744_v0  ;;  %v4582_v1 = vld [vmem:[%s5828_s1] sm:$0xff]   ;;  %4072 = vmatprep.mubr.msk.bf16.mxu0 %vm4745_vm0, %v4744_v0  ;;  %v4583_v2 = vld [vmem:[%s5828_s1 + $0x8] sm:$0xff]   ;;  %v4584_v3 = vld [vmem:[%s5828_s1 + $0x10] sm:$0xff]   ;;  %v4746_v23 = vmov 65535   ;;  %vm865_vm3 = vcmask 285696   ;;  %vm3417_vm4 = vcmask 318464  }
   0x2   :  { %4156 = vmatprep.subr.bf16.mxu1 %v4744_v0  ;;  %4162 = vmatprep.mubr.msk.bf16.mxu1 %vm4745_vm0, %v4744_v0  ;;  %v4585_v4 = vld [vmem:[%s5828_s1 + $0x18] sm:$0xff]   ;;  %v4586_v5 = vld [vmem:[%s5828_s1 + $0x20] sm:$0xff]   ;;  %v4587_v6 = vld [vmem:[%s5828_s1 + $0x28] sm:$0xff]   ;;  %v871_v24 = vsel %vm869_vm1, 4294967295, %v4746_v23  ;;  %vm3541_vm5 = vcmask 318720   ;;  %vm3518_vm6 = vcmask 261120  }
   0x3   :  { %4057 = vmatpush3.bf16.msra.mxu0 %v4582_v1  ;;  %v4601_v7 = vld [vmem:[%s5830_s3] sm:$0xff]   ;;  %v4588_v8 = vld [vmem:[%s5828_s1 + $0x30] sm:$0xff]   ;;  %v4602_v9 = vld [vmem:[%s5830_s3 + $0x8] sm:$0xff]   ;;  %v4899_v25 = vsel %vm870_vm2, %v871_v24, 0  ;;  %vm3552_vm7 = vcmask 56320   ;;  %vm3567_vm8 = vcmask 64512  }
   0x4   :  { %4058 = vmatprep.subr.bf16.mxu0 %v4744_v0  ;;  %4157 = vmatpush3.bf16.msra.mxu1 %v4601_v7  ;;  %v4589_v10 = vld [vmem:[%s5828_s1 + $0x38] sm:$0xff]   ;;  %v4590_v11 = vld [vmem:[%s5829_s0] sm:$0xff]   ;;  %v4591_v12 = vld [vmem:[%s5829_s0 + $0x8] sm:$0xff]  }
   0x5   :  { %4158 = vmatprep.subr.bf16.mxu1 %v4744_v0  ;;  %v4592_v13 = vld [vmem:[%s5829_s0 + $0x10] sm:$0xff]   ;;  %v4593_v14 = vld [vmem:[%s5829_s0 + $0x18] sm:$0xff]   ;;  %v4594_v15 = vld [vmem:[%s5829_s0 + $0x20] sm:$0xff]  }
   0x6   :  { %v4595_v16 = vld [vmem:[%s5829_s0 + $0x28] sm:$0xff]   ;;  %v4596_v17 = vld [vmem:[%s5829_s0 + $0x30] sm:$0xff]   ;;  %v4597_v18 = vld [vmem:[%s5829_s0 + $0x38] sm:$0xff]  }
   0x7   :  { %4059 = vmatpush3.bf16.msra.mxu0 %v4583_v2  ;;  %v4598_v19 = vld [vmem:[%s5829_s0 + $0x40] sm:$0xff]   ;;  %v4599_v20 = vld [vmem:[%s5829_s0 + $0x48] sm:$0xff]   ;;  %v4600_v21 = vld [vmem:[%s5829_s0 + $0x50] sm:$0xff]  }
   0x8   :  { %4060 = vmatprep.subr.bf16.mxu0 %v4744_v0  ;;  %4159 = vmatpush3.bf16.msra.mxu1 %v4602_v9  ;;  %v4603_v22 = vld [vmem:[%s5830_s3 + $0x10] ss:$0 sps:$4 sm:$0x33]   ;;  %v4604_v27 = vld [vmem:[%s5829_s0 + $0x58] sm:$0xff]   ;;  %v4608_v28 = vld [vmem:[%s5829_s0 + $0x60] sm:$0xff]  }
   0x9   :  { %4160 = vmatprep.subr.bf16.mxu1 %v4744_v0  ;;  %v874_v26 = vand.u32 %v4603_v22, %v4899_v25  ;;  %v4612_v29 = vld [vmem:[%s5830_s3 + $0x140] sm:$0xff]   ;;  %v4613_v30 = vld [vmem:[%s5829_s0 + $0x68] sm:$0xff]   ;;  %v4617_v31 = vld [vmem:[%s5829_s0 + $0x70] sm:$0xff]  }
   0xa   :  { %v4621_v32 = vld [vmem:[%s5829_s0 + $0x78] sm:$0xff]   ;;  %v4625_v33 = vld [vmem:[%s5829_s0 + $0x80] sm:$0xff]   ;;  %v4629_v34 = vld [vmem:[%s5829_s0 + $0x88] sm:$0xff]  }
   0xb   :  { %4061 = vmatpush3.bf16.msra.mxu0 %v4584_v3  ;;  %v4632_v35 = vld [vmem:[%s5830_s3 + $0x148] sm:$0xff]   ;;  %v4634_v36 = vld [vmem:[%s5829_s0 + $0x90] sm:$0xff]   ;;  %v4638_v37 = vld [vmem:[%s5829_s0 + $0x98] sm:$0xff]  }
   0xc   :  { %4062 = vmatprep.subr.bf16.mxu0 %v4744_v0  ;;  %4161 = vmatpush3.bf16.msra.mxu1 %v874_v26  ;;  %v4642_v38 = vld [vmem:[%s5829_s0 + $0xa0] sm:$0xff]   ;;  %v4605_v46 = vld [vmem:[%s5830_s3 + $0x14] sm:$0xff]   ;;  %v4650_v56 = vld [vmem:[%s5830_s3 + $0x150] ss:$0 sps:$4 sm:$0x33]  }
   0xd   :  { %4166 = vmatprep.subr.bf16.mxu1 %v4744_v0  ;;  %v4964_v39 = vld [vmem:[%s5831_s2] ss:$0 sm:$0xff]  ;;  %v4607_v49 = vld [vmem:[%s5830_s3 + $0x24] ss:$0 sps:$4 sm:$0x33]   ;;  %v1850_v58 = vand.u32 %v4650_v56, %v4899_v25  ;;  %v4609_v59 = vld [vmem:[%s5830_s3 + $0x28] sm:$0xff]  }
   0xe   :  { %v4606_v48 = vld [vmem:[%s5830_s3 + $0x1c] sm:$0xff]   ;;  %v935_v55 = vand.u32 %v4607_v49, %v4899_v25  ;;  %v4610_v3 = vld [vmem:[%s5830_s3 + $0x30] sm:$0xff]  }
   0xf   :  { %4063 = vmatpush3.bf16.msra.mxu0 %v4585_v4  ;;  %v4611_v4 = vld [vmem:[%s5830_s3 + $0x38] ss:$0 sps:$4 sm:$0x33]   ;;  %v4618_v22 = vld [vmem:[%s5830_s3 + $0x50] sm:$0xff]  }
  0x10   :  { %4064 = vmatprep.subr.bf16.mxu0 %v4744_v0 }
  0x13   :  { %4065 = vmatpush3.bf16.msra.mxu0 %v4586_v5 }
  0x14   :  { %4066 = vmatprep.subr.bf16.mxu0 %v4744_v0 }
  0x17   :  { %4067 = vmatpush3.bf16.msra.mxu0 %v4587_v6  ;;  %v996_v6 = vand.u32 %v4611_v4, %v4899_v25 }
  0x18   :  { %4068 = vmatprep.subr.bf16.mxu0 %v4744_v0 }
  0x1b   :  { %4069 = vmatpush3.bf16.msra.mxu0 %v4588_v8 }
  0x1c   :  { %4070 = vmatprep.subr.bf16.mxu0 %v4744_v0 }
  0x1f   :  { %4071 = vmatpush3.bf16.msra.mxu0 %v4589_v10 }
  0x20   :  { %4316 = vmatprep.subr.bf16.mxu0 %v4744_v0 }
  0x22   :  { %4073 = vmatmul.mubr.bf16.vlgmr.msra.gmra.mrb[0].mxu0 %v4590_v11 }
  0x23   :  { %4076 = vmatprep.mubr.msk.bf16.mxu0 %vm4745_vm0, %v4744_v0  ;;  %4317 = vmatpush3.bf16.msra.mxu0 %v4612_v29 }
  0x24   :  { %4318 = vmatprep.subr.bf16.mxu0 %v4744_v0 }
  0x27   :  { %4319 = vmatpush3.bf16.msra.mxu0 %v4632_v35 }
  0x28   :  { %4320 = vmatprep.subr.bf16.mxu0 %v4744_v0 }
  0x2a   :  { %4077 = vmatmul.mubr.bf16.gmra.mrb[4].mxu0 %v4591_v12  ;;  %v4614_v12 = vld [vmem:[%s5830_s3 + $0x3c] sm:$0xff]  }
  0x2b   :  { %4080 = vmatprep.mubr.msk.bf16.mxu0 %vm4745_vm0, %v4744_v0  ;;  %4321 = vmatpush3.bf16.msra.mxu0 %v1850_v58 }
  0x2c   :  { %4336 = vmatprep.subr.bf16.mxu0 %v4744_v0 }
  0x32   :  { %4081 = vmatmul.mubr.bf16.gmra.mrb[8].mxu0 %v4592_v13  ;;  %v4615_v13 = vld [vmem:[%s5830_s3 + $0x44] sm:$0xff]  }
  0x33   :  { %4084 = vmatprep.mubr.msk.bf16.mxu0 %vm4745_vm0, %v4744_v0 }
  0x3a   :  { %4085 = vmatmul.mubr.bf16.gmra.mrb[12].mxu0 %v4593_v14  ;;  %v4616_v14 = vld [vmem:[%s5830_s3 + $0x4c] ss:$0 sps:$4 sm:$0x33]  }
  0x3b   :  { %4088 = vmatprep.mubr.msk.bf16.mxu0 %vm4745_vm0, %v4744_v0 }
  0x42   :  { %4089 = vmatmul.mubr.bf16.gmra.mrb[16].mxu0 %v4594_v15 }
  0x43   :  { %4092 = vmatprep.mubr.msk.bf16.mxu0 %vm4745_vm0, %v4744_v0 }
  0x4a   :  { %4093 = vmatmul.mubr.bf16.gmra.mrb[20].mxu0 %v4595_v16 }
  0x4b   :  { %4096 = vmatprep.mubr.msk.bf16.mxu0 %vm4745_vm0, %v4744_v0 }
  0x52   :  { %4097 = vmatmul.mubr.bf16.gmra.mrb[24].mxu0 %v4596_v17 }
  0x53   :  { %4100 = vmatprep.mubr.msk.bf16.mxu0 %vm4745_vm0, %v4744_v0 }
  0x5a   :  { %4101 = vmatmul.mubr.bf16.gmra.mrb[28].mxu0 %v4597_v18 }
  0x5b   :  { %4104 = vmatprep.mubr.msk.bf16.mxu0 %vm4745_vm0, %v4744_v0 }
  0x62   :  { %4105 = vmatmul.mubr.bf16.gmra.mrb[32].mxu0 %v4598_v19 }
  0x63   :  { %4108 = vmatprep.mubr.msk.bf16.mxu0 %vm4745_vm0, %v4744_v0 }
  0x6a   :  { %4109 = vmatmul.mubr.bf16.gmra.mrb[36].mxu0 %v4599_v20  ;;  %v1057_v20 = vand.u32 %v4616_v14, %v4899_v25  ;;  %v4631_v14 = vld [vmem:[%s5830_s3 + $0x94] sm:$0xff]  }
  0x6b   :  { %4112 = vmatprep.mubr.msk.bf16.mxu0 %vm4745_vm0, %v4744_v0 }
  0x72   :  { %4113 = vmatmul.mubr.bf16.gmra.mrb[40].mxu0 %v4600_v21 }
  0x73   :  { %4116 = vmatprep.mubr.msk.bf16.mxu0 %vm4745_vm0, %v4744_v0 }
  0x7a   :  { %4117 = vmatmul.mubr.bf16.gmra.mrb[44].mxu0 %v4604_v27 }
  0x7b   :  { %4120 = vmatprep.mubr.msk.bf16.mxu0 %vm4745_vm0, %v4744_v0 }
  0x82   :  { %4121 = vmatmul.mubr.bf16.gmra.mrb[48].mxu0 %v4608_v28 }
  0x83   :  { %4124 = vmatprep.mubr.msk.bf16.mxu0 %vm4745_vm0, %v4744_v0 }
  0x8a   :  { %4125 = vmatmul.mubr.bf16.gmra.mrb[52].mxu0 %v4613_v30  ;;  %v4619_v30 = vld [vmem:[%s5830_s3 + $0x58] sm:$0xff]  }
  0x8b   :  { %4128 = vmatprep.mubr.msk.bf16.mxu0 %vm4745_vm0, %v4744_v0 }
  0x92   :  { %4129 = vmatmul.mubr.bf16.gmra.mrb[56].mxu0 %v4617_v31  ;;  %v4620_v31 = vld [vmem:[%s5830_s3 + $0x60] ss:$0 sps:$4 sm:$0x33]  }
  0x93   :  { %4132 = vmatprep.mubr.msk.bf16.mxu0 %vm4745_vm0, %v4744_v0 }
  0x9a   :  { %4133 = vmatmul.mubr.bf16.gmra.mrb[60].mxu0 %v4621_v32 }
  0x9b   :  { %4136 = vmatprep.mubr.msk.bf16.mxu0 %vm4745_vm0, %v4744_v0 }
  0xa2   :  { %4137 = vmatmul.mubr.bf16.gmra.mrb[64].mxu0 %v4625_v33  ;;  %v1118_v33 = vand.u32 %v4620_v31, %v4899_v25 }
  0xa3   :  { %4140 = vmatprep.mubr.msk.bf16.mxu0 %vm4745_vm0, %v4744_v0 }
  0xaa   :  { %4141 = vmatmul.mubr.bf16.gmra.mrb[68].mxu0 %v4629_v34 }
  0xab   :  { %4144 = vmatprep.mubr.msk.bf16.mxu0 %vm4745_vm0, %v4744_v0 }
  0xb2   :  { %4145 = vmatmul.mubr.bf16.gmra.mrb[72].mxu0 %v4634_v36 }
  0xb3   :  { %4148 = vmatprep.mubr.msk.bf16.mxu0 %vm4745_vm0, %v4744_v0 }
  0xba   :  { %4149 = vmatmul.mubr.bf16.gmra.mrb[76].mxu0 %v4638_v37 }
  0xbb   :  { %4152 = vmatprep.mubr.msk.bf16.mxu0 %vm4745_vm0, %v4744_v0 }
  0xc2   :  { %4153 = vmatmul.mubr.bf16.gmra.mrb[80].mxu0 %v4642_v38 }
  0xc3   :  { %4322 = vmatprep.mubr.msk.bf16.mxu0 %vm4745_vm0, %v4744_v0 }
  0xf5   :  { %v305_v40 = vpop.f32.mrb[0].mxu0 }
  0xf6   :  { %v306_v41 = vadd.f32 %v4964_v39, %v305_v40  ;;  %v4074_v42 = vpop.f32.mrb[1].mxu0  ;;  %v4622_v40 = vld [vmem:[%s5830_s3 + $0x64] sm:$0xff]  }
  0xf7   :  { %v308_v43 = vpop.f32.mrb[2].mxu0  ;;  %v4624_v42 = vld [vmem:[%s5830_s3 + $0x74] ss:$0 sps:$4 sm:$0x33]  }
  0xf8   :  { %v472_v44 = vmax.f32 %v306_v41, 0.0  ;;  %v4075_v45 = vpop.f32.mrb[3].mxu0  ;;  %v309_v51 = vadd.f32 %v4964_v39, %v308_v43  ;;  %v4623_v41 = vld [vmem:[%s5830_s3 + $0x6c] sm:$0xff]  }
  0xfa   :  { %v3817_v47 = vpack.c.bf16 %v472_v44, %v472_v44  ;;  %v473_v57 = vmax.f32 %v309_v51, 0.0 }
  0xfc   :  { %4163 = vmatmul.mubr.msk.bf16.vlgmr.msra.gmra.mrb[0].mxu1 %vm865_vm3, %v3817_v47  ;;  %v3818_v61 = vpack.c.bf16 %v473_v57, %v473_v57 }
  0xfd   :  { %4167 = vmatpush3.bf16.msra.mxu1 %v4605_v46  ;;  %4172 = vmatprep.mubr.msk.bf16.mxu1 %vm4745_vm0, %v4744_v0  ;;  %v313_v50 = vpop.f32.mrb[4].mxu0 }
  0xfe   :  { %4168 = vmatprep.subr.bf16.mxu1 %v4744_v0  ;;  %v4078_v52 = vpop.f32.mrb[5].mxu0  ;;  %v314_v1 = vadd.f32 %v4964_v39, %v313_v50  ;;  %v4626_v50 = vld [vmem:[%s5830_s3 + $0x78] sm:$0xff]  }
  0xff   :  { %v316_v53 = vpop.f32.mrb[6].mxu0 }
 0x100   :  { %v4079_v54 = vpop.f32.mrb[7].mxu0  ;;  %v474_v5 = vmax.f32 %v314_v1, 0.0  ;;  %v317_v16 = vadd.f32 %v4964_v39, %v316_v53 }
 0x101   :  { %4169 = vmatpush3.bf16.msra.mxu1 %v4606_v48  ;;  %v1179_v48 = vand.u32 %v4624_v42, %v4899_v25  ;;  %v4636_v42 = vld [vmem:[%s5830_s3 + $0xa8] sm:$0xff]  }
 0x102   :  { %4170 = vmatprep.subr.bf16.mxu1 %v4744_v0  ;;  %v3819_v10 = vpack.c.bf16 %v474_v5, %v474_v5  ;;  %v475_v21 = vmax.f32 %v317_v16, 0.0  ;;  %v4667_v5 = vld [vmem:[%s5830_s3 + $0x178] ss:$0 sps:$4 sm:$0x33]  }
 0x103   :  { %v4633_v16 = vld [vmem:[%s5830_s3 + $0x9c] ss:$0 sps:$4 sm:$0x33]  }
 0x104   :  { %v3820_v24 = vpack.c.bf16 %v475_v21, %v475_v21  ;;  %v4669_v21 = vld [vmem:[%s5830_s3 + $0x190] sm:$0xff]  }
 0x105   :  { %4171 = vmatpush3.bf16.msra.mxu1 %v935_v55  ;;  %v321_v60 = vpop.f32.mrb[8].mxu0 }
 0x106   :  { %4176 = vmatprep.subr.bf16.mxu1 %v4744_v0  ;;  %v4082_v62 = vpop.f32.mrb[9].mxu0  ;;  %v322_v28 = vadd.f32 %v4964_v39, %v321_v60  ;;  %v4628_v60 = vld [vmem:[%s5830_s3 + $0x88] ss:$0 sps:$4 sm:$0x33]  }
 0x107   :  { %v4992_v63 = vpop.f32.mrb[10].mxu0  ;;  %v1240_v1 = vand.u32 %v4628_v60, %v4899_v25 }
 0x108   :  { %4173 = vmatmul.mubr.msk.bf16.vlgmr.msra.gmra.mrb[4].mxu1 %vm865_vm3, %v3818_v61  ;;  %v4083_v2 = vpop.f32.mrb[11].mxu0  ;;  %v476_v32 = vmax.f32 %v322_v28, 0.0  ;;  %v325_v44 = vadd.f32 %v4964_v39, %v4992_v63  ;;  %v4663_v61 = vld [vmem:[%s5830_s3 + $0x168] sm:$0xff]  }
 0x109   :  { %4177 = vmatpush3.bf16.msra.mxu1 %v4609_v59  ;;  %4182 = vmatprep.mubr.msk.bf16.mxu1 %vm4745_vm0, %v4744_v0  ;;  %v4627_v59 = vld [vmem:[%s5830_s3 + $0x80] sm:$0xff]  }
 0x10a   :  { %4178 = vmatprep.subr.bf16.mxu1 %v4744_v0  ;;  %v3821_v37 = vpack.c.bf16 %v476_v32, %v476_v32  ;;  %v477_v49 = vmax.f32 %v325_v44, 0.0  ;;  %v4635_v32 = vld [vmem:[%s5830_s3 + $0xa0] sm:$0xff]   ;;  %v4637_v44 = vld [vmem:[%s5830_s3 + $0xb0] ss:$0 sps:$4 sm:$0x33]  }
 0x10c   :  { %v3822_v52 = vpack.c.bf16 %v477_v49, %v477_v49 }
 0x10d   :  { %4179 = vmatpush3.bf16.msra.mxu1 %v4610_v3  ;;  %v5006_v7 = vpop.f32.mrb[12].mxu0  ;;  %v4665_v3 = vld [vmem:[%s5830_s3 + $0x170] sm:$0xff]  }
 0x10e   :  { %4180 = vmatprep.subr.bf16.mxu1 %v4744_v0  ;;  %v4086_v8 = vpop.f32.mrb[13].mxu0  ;;  %v330_v56 = vadd.f32 %v4964_v39, %v5006_v7 }
 0x10f   :  { %v5009_v9 = vpop.f32.mrb[14].mxu0 }
 0x110   :  { %v4087_v11 = vpop.f32.mrb[15].mxu0  ;;  %v478_v63 = vmax.f32 %v330_v56, 0.0  ;;  %v4639_v56 = vld [vmem:[%s5830_s3 + $0xb4] sm:$0xff]  }
 0x111   :  { %4181 = vmatpush3.bf16.msra.mxu1 %v996_v6  ;;  %v4630_v11 = vld [vmem:[%s5830_s3 + $0x8c] sm:$0xff]  }
 0x112   :  { %4186 = vmatprep.subr.bf16.mxu1 %v4744_v0  ;;  %v3823_v8 = vpack.c.bf16 %v478_v63, %v478_v63 }
 0x114   :  { %4183 = vmatmul.mubr.msk.bf16.vlgmr.msra.gmra.mrb[8].mxu1 %vm865_vm3, %v3819_v10 }
 0x115   :  { %4187 = vmatpush3.bf16.msra.mxu1 %v4614_v12  ;;  %4192 = vmatprep.mubr.msk.bf16.mxu1 %vm4745_vm0, %v4744_v0  ;;  %v5024_v15 = vpop.f32.mrb[16].mxu0 }
 0x116   :  { %4188 = vmatprep.subr.bf16.mxu1 %v4744_v0  ;;  %v4090_v17 = vpop.f32.mrb[17].mxu0 }
 0x117   :  { %v5028_v18 = vpop.f32.mrb[18].mxu0 }
 0x118   :  { %v4091_v19 = vpop.f32.mrb[19].mxu0 }
 0x119   :  { %4189 = vmatpush3.bf16.msra.mxu1 %v4615_v13  ;;  %v1972_v13 = vand.u32 %v4667_v5, %v4899_v25 }
 0x11a   :  { %4190 = vmatprep.subr.bf16.mxu1 %v4744_v0 }
 0x11d   :  { %4191 = vmatpush3.bf16.msra.mxu1 %v1057_v20  ;;  %v5035_v23 = vpop.f32.mrb[20].mxu0  ;;  %v333_v20 = vadd.f32 %v4964_v39, %v5009_v9 }
 0x11e   :  { %4196 = vmatprep.subr.bf16.mxu1 %v4744_v0  ;;  %v4094_v26 = vpop.f32.mrb[21].mxu0 }
 0x11f   :  { %v5038_v27 = vpop.f32.mrb[22].mxu0  ;;  %v479_v9 = vmax.f32 %v333_v20, 0.0  ;;  %v4644_v20 = vld [vmem:[%s5830_s3 + $0xd0] sm:$0xff]  }
 0x120   :  { %4193 = vmatmul.mubr.msk.bf16.vlgmr.msra.gmra.mrb[12].mxu1 %vm865_vm3, %v3820_v24  ;;  %v4095_v29 = vpop.f32.mrb[23].mxu0  ;;  %v1301_v24 = vand.u32 %v4633_v16, %v4899_v25 }
 0x121   :  { %4197 = vmatpush3.bf16.msra.mxu1 %v4618_v22  ;;  %4202 = vmatprep.mubr.msk.bf16.mxu1 %vm4745_vm0, %v4744_v0  ;;  %v4671_v29 = vld [vmem:[%s5830_s3 + $0x198] sm:$0xff]  }
 0x122   :  { %4198 = vmatprep.subr.bf16.mxu1 %v4744_v0 }
 0x125   :  { %4199 = vmatpush3.bf16.msra.mxu1 %v4619_v30  ;;  %v5052_v34 = vpop.f32.mrb[24].mxu0  ;;  %v4673_v30 = vld [vmem:[%s5830_s3 + $0x1a0] ss:$0 sps:$4 sm:$0x33]  }
 0x126   :  { %4200 = vmatprep.subr.bf16.mxu1 %v4744_v0  ;;  %v4098_v35 = vpop.f32.mrb[25].mxu0 }
 0x127   :  { %v5055_v36 = vpop.f32.mrb[26].mxu0  ;;  %v3824_v35 = vpack.c.bf16 %v479_v9, %v479_v9 }
 0x128   :  { %v4099_v38 = vpop.f32.mrb[27].mxu0 }
 0x129   :  { %4201 = vmatpush3.bf16.msra.mxu1 %v1118_v33 }
 0x12a   :  { %4206 = vmatprep.subr.bf16.mxu1 %v4744_v0 }
 0x12c   :  { %4203 = vmatmul.mubr.msk.bf16.vlgmr.msra.gmra.mrb[16].mxu1 %vm865_vm3, %v3821_v37  ;;  %v2094_v37 = vand.u32 %v4673_v30, %v4899_v25  ;;  %v4689_v30 = vld [vmem:[%s5830_s3 + $0x210] sm:$0xff]  }
 0x12d   :  { %4207 = vmatpush3.bf16.msra.mxu1 %v4622_v40  ;;  %4212 = vmatprep.mubr.msk.bf16.mxu1 %vm4745_vm0, %v4744_v0  ;;  %v5070_v43 = vpop.f32.mrb[28].mxu0 }
 0x12e   :  { %4208 = vmatprep.subr.bf16.mxu1 %v4744_v0  ;;  %v4102_v45 = vpop.f32.mrb[29].mxu0 }
 0x12f   :  { %v5075_v46 = vpop.f32.mrb[30].mxu0 }
 0x130   :  { %v4103_v47 = vpop.f32.mrb[31].mxu0 }
 0x131   :  { %4209 = vmatpush3.bf16.msra.mxu1 %v4623_v41  ;;  %v338_v41 = vadd.f32 %v4964_v39, %v5024_v15  ;;  %v4675_v15 = vld [vmem:[%s5830_s3 + $0x1b8] sm:$0xff]  }
 0x132   :  { %4210 = vmatprep.subr.bf16.mxu1 %v4744_v0 }
 0x133   :  { %v480_v47 = vmax.f32 %v338_v41, 0.0 }
 0x135   :  { %4211 = vmatpush3.bf16.msra.mxu1 %v1179_v48  ;;  %v369_v51 = vpop.f32.mrb[32].mxu0  ;;  %v1362_v48 = vand.u32 %v4637_v44, %v4899_v25  ;;  %v4648_v44 = vld [vmem:[%s5830_s3 + $0xec] ss:$0 sps:$4 sm:$0x33]  }
 0x136   :  { %4216 = vmatprep.subr.bf16.mxu1 %v4744_v0  ;;  %v370_v53 = vadd.f32 %v4964_v39, %v369_v51  ;;  %v4106_v54 = vpop.f32.mrb[33].mxu0  ;;  %v4677_v51 = vld [vmem:[%s5830_s3 + $0x1c0] sm:$0xff]  }
 0x137   :  { %v5084_v55 = vpop.f32.mrb[34].mxu0  ;;  %v3825_v54 = vpack.c.bf16 %v480_v47, %v480_v47  ;;  %v4693_v47 = vld [vmem:[%s5830_s3 + $0x230] sm:$0xff]  }
 0x138   :  { %4213 = vmatmul.mubr.msk.bf16.vlgmr.msra.gmra.mrb[20].mxu1 %vm865_vm3, %v3822_v52  ;;  %v488_v57 = vmax.f32 %v370_v53, 0.0  ;;  %v4107_v58 = vpop.f32.mrb[35].mxu0  ;;  %v4679_v52 = vld [vmem:[%s5830_s3 + $0x1c8] ss:$0 sps:$4 sm:$0x33]  }
 0x139   :  { %4217 = vmatpush3.bf16.msra.mxu1 %v4626_v50  ;;  %4222 = vmatprep.mubr.msk.bf16.mxu1 %vm4745_vm0, %v4744_v0  ;;  %v2216_v58 = vand.u32 %v4679_v52, %v4899_v25 }
 0x13a   :  { %4218 = vmatprep.subr.bf16.mxu1 %v4744_v0  ;;  %v3833_v62 = vpack.c.bf16 %v488_v57, %v488_v57 }
 0x13c   :  { %4323 = vmatmul.mubr.msk.bf16.vlgmr.msra.gmra.mrb[84].mxu0 %vm865_vm3, %v3833_v62  ;;  %v4641_v62 = vld [vmem:[%s5830_s3 + $0xc4] ss:$0 sps:$4 sm:$0x33]  }
 0x13d   :  { %4219 = vmatpush3.bf16.msra.mxu1 %v4627_v59  ;;  %4337 = vmatpush3.bf16.msra.mxu0 %v4663_v61  ;;  %v377_v2 = vpop.f32.mrb[36].mxu0  ;;  %v4640_v61 = vld [vmem:[%s5830_s3 + $0xbc] sm:$0xff]  }
 0x13e   :  { %4220 = vmatprep.subr.bf16.mxu1 %v4744_v0  ;;  %4338 = vmatprep.subr.bf16.mxu0 %v4744_v0  ;;  %v378_v4 = vadd.f32 %v4964_v39, %v377_v2  ;;  %v4110_v6 = vpop.f32.mrb[37].mxu0  ;;  %v4681_v2 = vld [vmem:[%s5830_s3 + $0x1e0] sm:$0xff]  }
 0x13f   :  { %4342 = vmatprep.mubr.msk.bf16.mxu0 %vm4745_vm0, %v4744_v0  ;;  %v5114_v7 = vpop.f32.mrb[38].mxu0 }
 0x140   :  { %v4111_v10 = vpop.f32.mrb[39].mxu0  ;;  %v490_v12 = vmax.f32 %v378_v4, 0.0 }
 0x141   :  { %4221 = vmatpush3.bf16.msra.mxu1 %v1240_v1  ;;  %4339 = vmatpush3.bf16.msra.mxu0 %v4665_v3  ;;  %v341_v1 = vadd.f32 %v4964_v39, %v5028_v18  ;;  %v1423_v3 = vand.u32 %v4641_v62, %v4899_v25  ;;  %v4683_v18 = vld [vmem:[%s5830_s3 + $0x1e8] sm:$0xff]   ;;  %v354_v62 = vadd.f32 %v4964_v39, %v5052_v34  ;;  %v4699_v34 = vld [vmem:[%s5830_s3 + $0x258] sm:$0xff]  }
 0x142   :  { %4226 = vmatprep.subr.bf16.mxu1 %v4744_v0  ;;  %4340 = vmatprep.subr.bf16.mxu0 %v4744_v0  ;;  %v3835_v17 = vpack.c.bf16 %v490_v12, %v490_v12 }
 0x143   :  { %v481_v6 = vmax.f32 %v341_v1, 0.0  ;;  %v4652_v1 = vld [vmem:[%s5830_s3 + $0x100] ss:$0 sps:$4 sm:$0x33]  }
 0x144   :  { %4223 = vmatmul.mubr.msk.bf16.vlgmr.msra.gmra.mrb[24].mxu1 %vm865_vm3, %v3823_v8  ;;  %v4685_v8 = vld [vmem:[%s5830_s3 + $0x1f0] ss:$0 sps:$4 sm:$0x33]  }
 0x145   :  { %4227 = vmatpush3.bf16.msra.mxu1 %v4630_v11  ;;  %4232 = vmatprep.mubr.msk.bf16.mxu1 %vm4745_vm0, %v4744_v0  ;;  %v385_v19 = vpop.f32.mrb[40].mxu0  ;;  %v4643_v11 = vld [vmem:[%s5830_s3 + $0xc8] sm:$0xff]  }
 0x146   :  { %4228 = vmatprep.subr.bf16.mxu1 %v4744_v0  ;;  %4341 = vmatpush3.bf16.msra.mxu0 %v1972_v13  ;;  %v4114_v22 = vpop.f32.mrb[41].mxu0  ;;  %v386_v26 = vadd.f32 %v4964_v39, %v385_v19  ;;  %v3826_v13 = vpack.c.bf16 %v481_v6, %v481_v6 }
 0x147   :  { %4356 = vmatprep.subr.bf16.mxu0 %v4744_v0  ;;  %v5141_v28 = vpop.f32.mrb[42].mxu0 }
 0x148   :  { %v4115_v31 = vpop.f32.mrb[43].mxu0  ;;  %v492_v33 = vmax.f32 %v386_v26, 0.0 }
 0x149   :  { %4229 = vmatpush3.bf16.msra.mxu1 %v4631_v14  ;;  %4343 = vmatmul.mubr.msk.bf16.vlgmr.msra.gmra.mrb[88].mxu0 %vm865_vm3, %v3835_v17  ;;  %v2338_v14 = vand.u32 %v4685_v8, %v4899_v25  ;;  %v346_v17 = vadd.f32 %v4964_v39, %v5035_v23  ;;  %v4687_v23 = vld [vmem:[%s5830_s3 + $0x208] sm:$0xff]   ;;  %v4691_v31 = vld [vmem:[%s5830_s3 + $0x218] ss:$0 sps:$4 sm:$0x33]   ;;  %v4701_v8 = vld [vmem:[%s5830_s3 + $0x260] sm:$0xff]  }
 0x14a   :  { %4230 = vmatprep.subr.bf16.mxu1 %v4744_v0  ;;  %4357 = vmatpush3.bf16.msra.mxu0 %v4669_v21  ;;  %v3837_v45 = vpack.c.bf16 %v492_v33, %v492_v33  ;;  %v4645_v21 = vld [vmem:[%s5830_s3 + $0xd8] ss:$0 sps:$4 sm:$0x33]  }
 0x14b   :  { %4358 = vmatprep.subr.bf16.mxu0 %v4744_v0  ;;  %4362 = vmatprep.mubr.msk.bf16.mxu0 %vm4745_vm0, %v4744_v0  ;;  %v1484_v26 = vand.u32 %v4645_v21, %v4899_v25  ;;  %v4655_v21 = vld [vmem:[%s5830_s3 + $0x114] ss:$0 sps:$4 sm:$0x33]  }
 0x14d   :  { %4231 = vmatpush3.bf16.msra.mxu1 %v1301_v24  ;;  %v393_v38 = vpop.f32.mrb[44].mxu0  ;;  %v482_v24 = vmax.f32 %v346_v17, 0.0 }
 0x14e   :  { %4236 = vmatprep.subr.bf16.mxu1 %v4744_v0  ;;  %4359 = vmatpush3.bf16.msra.mxu0 %v4671_v29  ;;  %v4118_v40 = vpop.f32.mrb[45].mxu0  ;;  %v394_v49 = vadd.f32 %v4964_v39, %v393_v38  ;;  %v2460_v38 = vand.u32 %v4691_v31, %v4899_v25 }
 0x14f   :  { %4360 = vmatprep.subr.bf16.mxu0 %v4744_v0  ;;  %v5178_v50 = vpop.f32.mrb[46].mxu0  ;;  %v3827_v33 = vpack.c.bf16 %v482_v24, %v482_v24  ;;  %v4705_v24 = vld [vmem:[%s5830_s3 + $0x280] sm:$0xff]  }
 0x150   :  { %4233 = vmatmul.mubr.msk.bf16.vlgmr.msra.gmra.mrb[28].mxu1 %vm865_vm3, %v3824_v35  ;;  %v4119_v53 = vpop.f32.mrb[47].mxu0  ;;  %v494_v57 = vmax.f32 %v394_v49, 0.0  ;;  %v4646_v35 = vld [vmem:[%s5830_s3 + $0xdc] sm:$0xff]  }
 0x151   :  { %4237 = vmatpush3.bf16.msra.mxu1 %v4635_v32  ;;  %4242 = vmatprep.mubr.msk.bf16.mxu1 %vm4745_vm0, %v4744_v0  ;;  %v4697_v53 = vld [vmem:[%s5830_s3 + $0x240] ss:$0 sps:$4 sm:$0x33]  }
 0x152   :  { %4238 = vmatprep.subr.bf16.mxu1 %v4744_v0  ;;  %4361 = vmatpush3.bf16.msra.mxu0 %v2094_v37  ;;  %v3839_v63 = vpack.c.bf16 %v494_v57, %v494_v57 }
 0x153   :  { %4376 = vmatprep.subr.bf16.mxu0 %v4744_v0 }
 0x155   :  { %4239 = vmatpush3.bf16.msra.mxu1 %v4636_v42  ;;  %4363 = vmatmul.mubr.msk.bf16.vlgmr.msra.gmra.mrb[92].mxu0 %vm865_vm3, %v3837_v45  ;;  %v401_v59 = vpop.f32.mrb[48].mxu0  ;;  %v4647_v42 = vld [vmem:[%s5830_s3 + $0xe4] sm:$0xff]  }
 0x156   :  { %4240 = vmatprep.subr.bf16.mxu1 %v4744_v0  ;;  %4377 = vmatpush3.bf16.msra.mxu0 %v4675_v15  ;;  %v4122_v60 = vpop.f32.mrb[49].mxu0  ;;  %v402_v4 = vadd.f32 %v4964_v39, %v401_v59  ;;  %v349_v15 = vadd.f32 %v4964_v39, %v5038_v27  ;;  %v4695_v27 = vld [vmem:[%s5830_s3 + $0x238] sm:$0xff]   ;;  %v2582_v59 = vand.u32 %v4697_v53, %v4899_v25  ;;  %v4713_v53 = vld [vmem:[%s5830_s3 + $0x2b0] sm:$0xff]  }
 0x157   :  { %4378 = vmatprep.subr.bf16.mxu0 %v4744_v0  ;;  %4382 = vmatprep.mubr.msk.bf16.mxu0 %vm4745_vm0, %v4744_v0  ;;  %v5215_v5 = vpop.f32.mrb[50].mxu0 }
 0x158   :  { %v4123_v10 = vpop.f32.mrb[51].mxu0  ;;  %v496_v12 = vmax.f32 %v402_v4, 0.0  ;;  %v483_v52 = vmax.f32 %v349_v15, 0.0  ;;  %v1606_v4 = vand.u32 %v4652_v1, %v4899_v25  ;;  %v4658_v15 = vld [vmem:[%s5830_s3 + $0x128] ss:$0 sps:$4 sm:$0x33]  }
 0x159   :  { %4241 = vmatpush3.bf16.msra.mxu1 %v1362_v48  ;;  %v1545_v48 = vand.u32 %v4648_v44, %v4899_v25  ;;  %v4703_v10 = vld [vmem:[%s5830_s3 + $0x268] ss:$0 sps:$4 sm:$0x33]   ;;  %v362_v44 = vadd.f32 %v4964_v39, %v5070_v43  ;;  %v4661_v1 = vld [vmem:[%s5830_s3 + $0x13c] ss:$0 sps:$4 sm:$0x33]  }
 0x15a   :  { %4246 = vmatprep.subr.bf16.mxu1 %v4744_v0  ;;  %4379 = vmatpush3.bf16.msra.mxu0 %v4677_v51  ;;  %v3841_v22 = vpack.c.bf16 %v496_v12, %v496_v12  ;;  %v4711_v43 = vld [vmem:[%s5830_s3 + $0x2a8] sm:$0xff]  }
 0x15b   :  { %4380 = vmatprep.subr.bf16.mxu0 %v4744_v0 }
 0x15c   :  { %4243 = vmatmul.mubr.msk.bf16.vlgmr.msra.gmra.mrb[32].mxu1 %vm865_vm3, %v3825_v54 }
 0x15d   :  { %4247 = vmatpush3.bf16.msra.mxu1 %v4639_v56  ;;  %4252 = vmatprep.mubr.msk.bf16.mxu1 %vm4745_vm0, %v4744_v0  ;;  %v409_v16 = vpop.f32.mrb[52].mxu0  ;;  %v4649_v56 = vld [vmem:[%s5830_s3 + $0xf0] sm:$0xff]  }
 0x15e   :  { %4248 = vmatprep.subr.bf16.mxu1 %v4744_v0  ;;  %4381 = vmatpush3.bf16.msra.mxu0 %v2216_v58  ;;  %v4126_v19 = vpop.f32.mrb[53].mxu0  ;;  %v410_v9 = vadd.f32 %v4964_v39, %v409_v16  ;;  %v3828_v58 = vpack.c.bf16 %v483_v52, %v483_v52  ;;  %v2704_v16 = vand.u32 %v4703_v10, %v4899_v25 }
 0x15f   :  { %4396 = vmatprep.subr.bf16.mxu0 %v4744_v0  ;;  %v5252_v29 = vpop.f32.mrb[54].mxu0 }
 0x160   :  { %v4127_v32 = vpop.f32.mrb[55].mxu0  ;;  %v498_v37 = vmax.f32 %v410_v9, 0.0 }
 0x161   :  { %4249 = vmatpush3.bf16.msra.mxu1 %v4640_v61  ;;  %4383 = vmatmul.mubr.msk.bf16.vlgmr.msra.gmra.mrb[96].mxu0 %vm865_vm3, %v3839_v63  ;;  %v4651_v63 = vld [vmem:[%s5830_s3 + $0xf8] sm:$0xff]   ;;  %v4709_v32 = vld [vmem:[%s5830_s3 + $0x290] ss:$0 sps:$4 sm:$0x33]  }
 0x162   :  { %4250 = vmatprep.subr.bf16.mxu1 %v4744_v0  ;;  %4397 = vmatpush3.bf16.msra.mxu0 %v4681_v2  ;;  %v3843_v45 = vpack.c.bf16 %v498_v37, %v498_v37 }
 0x163   :  { %4398 = vmatprep.subr.bf16.mxu0 %v4744_v0  ;;  %4402 = vmatprep.mubr.msk.bf16.mxu0 %vm4745_vm0, %v4744_v0 }
 0x165   :  { %4251 = vmatpush3.bf16.msra.mxu1 %v1423_v3  ;;  %v417_v40 = vpop.f32.mrb[56].mxu0  ;;  %v484_v3 = vmax.f32 %v354_v62, 0.0 }
 0x166   :  { %4256 = vmatprep.subr.bf16.mxu1 %v4744_v0  ;;  %4399 = vmatpush3.bf16.msra.mxu0 %v4683_v18  ;;  %v4130_v41 = vpop.f32.mrb[57].mxu0  ;;  %v418_v49 = vadd.f32 %v4964_v39, %v417_v40  ;;  %v2826_v40 = vand.u32 %v4709_v32, %v4899_v25  ;;  %v4725_v32 = vld [vmem:[%s5830_s3 + $0x300] sm:$0xff]  }
 0x167   :  { %4400 = vmatprep.subr.bf16.mxu0 %v4744_v0  ;;  %v5289_v51 = vpop.f32.mrb[58].mxu0  ;;  %v3829_v12 = vpack.c.bf16 %v484_v3, %v484_v3  ;;  %v4717_v3 = vld [vmem:[%s5830_s3 + $0x2d0] sm:$0xff]  }
 0x168   :  { %4253 = vmatmul.mubr.msk.bf16.vlgmr.msra.gmra.mrb[36].mxu1 %vm865_vm3, %v3826_v13  ;;  %v4131_v54 = vpop.f32.mrb[59].mxu0  ;;  %v500_v57 = vmax.f32 %v418_v49, 0.0  ;;  %v4653_v13 = vld [vmem:[%s5830_s3 + $0x104] sm:$0xff]   ;;  %v1728_v49 = vand.u32 %v4658_v15, %v4899_v25 }
 0x169   :  { %4257 = vmatpush3.bf16.msra.mxu1 %v4643_v11  ;;  %4262 = vmatprep.mubr.msk.bf16.mxu1 %vm4745_vm0, %v4744_v0  ;;  %v4715_v54 = vld [vmem:[%s5830_s3 + $0x2b8] ss:$0 sps:$4 sm:$0x33]   ;;  %v4670_v15 = vld [vmem:[%s5830_s3 + $0x184] sm:$0xff]  }
 0x16a   :  { %4258 = vmatprep.subr.bf16.mxu1 %v4744_v0  ;;  %4401 = vmatpush3.bf16.msra.mxu0 %v2338_v14  ;;  %v3845_v2 = vpack.c.bf16 %v500_v57, %v500_v57 }
 0x16b   :  { %4416 = vmatprep.subr.bf16.mxu0 %v4744_v0 }
 0x16d   :  { %4259 = vmatpush3.bf16.msra.mxu1 %v4644_v20  ;;  %4403 = vmatmul.mubr.msk.bf16.vlgmr.msra.gmra.mrb[100].mxu0 %vm865_vm3, %v3841_v22  ;;  %v425_v60 = vpop.f32.mrb[60].mxu0  ;;  %v4654_v20 = vld [vmem:[%s5830_s3 + $0x10c] sm:$0xff]  }
 0x16e   :  { %4260 = vmatprep.subr.bf16.mxu1 %v4744_v0  ;;  %4417 = vmatpush3.bf16.msra.mxu0 %v4687_v23  ;;  %v4134_v61 = vpop.f32.mrb[61].mxu0  ;;  %v426_v6 = vadd.f32 %v4964_v39, %v425_v60  ;;  %v357_v23 = vadd.f32 %v4964_v39, %v5055_v36  ;;  %v4707_v36 = vld [vmem:[%s5830_s3 + $0x288] sm:$0xff]   ;;  %v2948_v60 = vand.u32 %v4715_v54, %v4899_v25 }
 0x16f   :  { %4418 = vmatprep.subr.bf16.mxu0 %v4744_v0  ;;  %4422 = vmatprep.mubr.msk.bf16.mxu0 %vm4745_vm0, %v4744_v0  ;;  %v5326_v18 = vpop.f32.mrb[62].mxu0  ;;  %v4731_v54 = vld [vmem:[%s5830_s3 + $0x328] sm:$0xff]  }
 0x170   :  { %v4135_v11 = vpop.f32.mrb[63].mxu0  ;;  %v502_v14 = vmax.f32 %v426_v6, 0.0  ;;  %v485_v31 = vmax.f32 %v357_v23, 0.0  ;;  %v4666_v23 = vld [vmem:[%s5830_s3 + $0x164] ss:$0 sps:$4 sm:$0x33]  }
 0x171   :  { %4261 = vmatpush3.bf16.msra.mxu1 %v1484_v26  ;;  %v1667_v26 = vand.u32 %v4655_v21, %v4899_v25  ;;  %v4721_v11 = vld [vmem:[%s5830_s3 + $0x2e0] ss:$0 sps:$4 sm:$0x33]   ;;  %v373_v21 = vadd.f32 %v4964_v39, %v5084_v55  ;;  %v4723_v55 = vld [vmem:[%s5830_s3 + $0x2f8] sm:$0xff]  }
 0x172   :  { %4266 = vmatprep.subr.bf16.mxu1 %v4744_v0  ;;  %4419 = vmatpush3.bf16.msra.mxu0 %v4689_v30  ;;  %v3847_v22 = vpack.c.bf16 %v502_v14, %v502_v14 }
 0x173   :  { %4420 = vmatprep.subr.bf16.mxu0 %v4744_v0 }
 0x174   :  { %4263 = vmatmul.mubr.msk.bf16.vlgmr.msra.gmra.mrb[40].mxu1 %vm865_vm3, %v3827_v33 }
 0x175   :  { %4267 = vmatpush3.bf16.msra.mxu1 %v4646_v35  ;;  %4272 = vmatprep.mubr.msk.bf16.mxu1 %vm4745_vm0, %v4744_v0  ;;  %v433_v17 = vpop.f32.mrb[64].mxu0  ;;  %v4656_v35 = vld [vmem:[%s5830_s3 + $0x118] sm:$0xff]  }
 0x176   :  { %4268 = vmatprep.subr.bf16.mxu1 %v4744_v0  ;;  %4421 = vmatpush3.bf16.msra.mxu0 %v2460_v38  ;;  %v4138_v19 = vpop.f32.mrb[65].mxu0  ;;  %v434_v9 = vadd.f32 %v4964_v39, %v433_v17  ;;  %v3830_v38 = vpack.c.bf16 %v485_v31, %v485_v31  ;;  %v3070_v17 = vand.u32 %v4721_v11, %v4899_v25 }
 0x177   :  { %4436 = vmatprep.subr.bf16.mxu0 %v4744_v0  ;;  %v5363_v30 = vpop.f32.mrb[66].mxu0 }
 0x178   :  { %v4139_v33 = vpop.f32.mrb[67].mxu0  ;;  %v504_v37 = vmax.f32 %v434_v9, 0.0  ;;  %v1911_v9 = vand.u32 %v4666_v23, %v4899_v25 }
 0x179   :  { %4269 = vmatpush3.bf16.msra.mxu1 %v4647_v42  ;;  %4423 = vmatmul.mubr.msk.bf16.vlgmr.msra.gmra.mrb[104].mxu0 %vm865_vm3, %v3843_v45  ;;  %v4657_v45 = vld [vmem:[%s5830_s3 + $0x120] sm:$0xff]   ;;  %v4727_v33 = vld [vmem:[%s5830_s3 + $0x308] ss:$0 sps:$4 sm:$0x33]  }
 0x17a   :  { %4270 = vmatprep.subr.bf16.mxu1 %v4744_v0  ;;  %4437 = vmatpush3.bf16.msra.mxu0 %v4693_v47  ;;  %v3849_v47 = vpack.c.bf16 %v504_v37, %v504_v37 }
 0x17b   :  { %4438 = vmatprep.subr.bf16.mxu0 %v4744_v0  ;;  %4442 = vmatprep.mubr.msk.bf16.mxu0 %vm4745_vm0, %v4744_v0 }
 0x17d   :  { %4271 = vmatpush3.bf16.msra.mxu1 %v1545_v48  ;;  %v441_v41 = vpop.f32.mrb[68].mxu0  ;;  %v486_v48 = vmax.f32 %v362_v44, 0.0 }
 0x17e   :  { %4276 = vmatprep.subr.bf16.mxu1 %v4744_v0  ;;  %4439 = vmatpush3.bf16.msra.mxu0 %v4695_v27  ;;  %v4142_v42 = vpop.f32.mrb[69].mxu0  ;;  %v442_v52 = vadd.f32 %v4964_v39, %v441_v41  ;;  %v3192_v41 = vand.u32 %v4727_v33, %v4899_v25 }
 0x17f   :  { %4440 = vmatprep.subr.bf16.mxu0 %v4744_v0  ;;  %v5400_v27 = vpop.f32.mrb[70].mxu0  ;;  %v3831_v57 = vpack.c.bf16 %v486_v48, %v486_v48 }
 0x180   :  { %4273 = vmatmul.mubr.msk.bf16.vlgmr.msra.gmra.mrb[44].mxu1 %vm865_vm3, %v3828_v58  ;;  %v4659_v58 = vld [vmem:[%s5830_s3 + $0x12c] sm:$0xff]  }
 0x181   :  { %4277 = vmatpush3.bf16.msra.mxu1 %v4649_v56  ;;  %4282 = vmatprep.mubr.msk.bf16.mxu1 %vm4745_vm0, %v4744_v0  ;;  %v4143_v56 = vpop.f32.mrb[71].mxu0 }
 0x182   :  { %4278 = vmatprep.subr.bf16.mxu1 %v4744_v0  ;;  %4441 = vmatpush3.bf16.msra.mxu0 %v2582_v59  ;;  %v506_v59 = vmax.f32 %v442_v52, 0.0  ;;  %v4733_v56 = vld [vmem:[%s5830_s3 + $0x330] ss:$0 sps:$4 sm:$0x33]  }
 0x183   :  { %4456 = vmatprep.subr.bf16.mxu0 %v4744_v0 }
 0x185   :  { %4279 = vmatpush3.bf16.msra.mxu1 %v4651_v63  ;;  %4443 = vmatmul.mubr.msk.bf16.vlgmr.msra.gmra.mrb[108].mxu0 %vm865_vm3, %v3845_v2  ;;  %v449_v61 = vpop.f32.mrb[72].mxu0  ;;  %v4660_v63 = vld [vmem:[%s5830_s3 + $0x134] sm:$0xff]   ;;  %v3851_v2 = vpack.c.bf16 %v506_v59, %v506_v59  ;;  %v4674_v59 = vld [vmem:[%s5830_s3 + $0x1a4] sm:$0xff]  }
 0x186   :  { %4280 = vmatprep.subr.bf16.mxu1 %v4744_v0  ;;  %4457 = vmatpush3.bf16.msra.mxu0 %v4699_v34  ;;  %v4146_v62 = vpop.f32.mrb[73].mxu0  ;;  %v365_v34 = vadd.f32 %v4964_v39, %v5075_v46  ;;  %v450_v6 = vadd.f32 %v4964_v39, %v449_v61  ;;  %v4719_v46 = vld [vmem:[%s5830_s3 + $0x2d8] sm:$0xff]   ;;  %v3314_v61 = vand.u32 %v4733_v56, %v4899_v25 }
 0x187   :  { %4458 = vmatprep.subr.bf16.mxu0 %v4744_v0  ;;  %4462 = vmatprep.mubr.msk.bf16.mxu0 %vm4745_vm0, %v4744_v0 }
 0x188   :  { %v487_v10 = vmax.f32 %v365_v34, 0.0  ;;  %v508_v14 = vmax.f32 %v450_v6, 0.0 }
 0x189   :  { %4281 = vmatpush3.bf16.msra.mxu1 %v1606_v4  ;;  %v1789_v4 = vand.u32 %v4661_v1, %v4899_v25  ;;  %v4678_v1 = vld [vmem:[%s5830_s3 + $0x1b4] ss:$0 sps:$4 sm:$0x33]  }
 0x18a   :  { %4286 = vmatprep.subr.bf16.mxu1 %v4744_v0  ;;  %4459 = vmatpush3.bf16.msra.mxu0 %v4701_v8  ;;  %v5437_v8 = vpop.f32.mrb[74].mxu0 }
 0x18b   :  { %4460 = vmatprep.subr.bf16.mxu0 %v4744_v0 }
 0x18c   :  { %4283 = vmatmul.mubr.msk.bf16.vlgmr.msra.gmra.mrb[48].mxu1 %vm865_vm3, %v3829_v12  ;;  %v4147_v12 = vpop.f32.mrb[75].mxu0 }
 0x18d   :  { %4287 = vmatpush3.bf16.msra.mxu1 %v4653_v13  ;;  %4292 = vmatprep.mubr.msk.bf16.mxu1 %vm4745_vm0, %v4744_v0  ;;  %v4662_v13 = vld [vmem:[%s5830_s3 + $0x154] sm:$0xff]   ;;  %v457_v19 = vpop.f32.mrb[76].mxu0 }
 0x18e   :  { %4288 = vmatprep.subr.bf16.mxu1 %v4744_v0  ;;  %4461 = vmatpush3.bf16.msra.mxu0 %v2704_v16  ;;  %v3832_v16 = vpack.c.bf16 %v487_v10, %v487_v10  ;;  %v458_v31 = vadd.f32 %v4964_v39, %v457_v19 }
 0x18f   :  { %4476 = vmatprep.subr.bf16.mxu0 %v4744_v0 }
 0x191   :  { %4289 = vmatpush3.bf16.msra.mxu1 %v4654_v20  ;;  %4463 = vmatmul.mubr.msk.bf16.vlgmr.msra.gmra.mrb[112].mxu0 %vm865_vm3, %v3847_v22  ;;  %v4150_v20 = vpop.f32.mrb[77].mxu0  ;;  %v4664_v22 = vld [vmem:[%s5830_s3 + $0x15c] sm:$0xff]  }
 0x192   :  { %4290 = vmatprep.subr.bf16.mxu1 %v4744_v0  ;;  %4477 = vmatpush3.bf16.msra.mxu0 %v4705_v24  ;;  %v3853_v24 = vpack.c.bf16 %v508_v14, %v508_v14  ;;  %v4684_v14 = vld [vmem:[%s5830_s3 + $0x1dc] ss:$0 sps:$4 sm:$0x33]  }
 0x193   :  { %4478 = vmatprep.subr.bf16.mxu0 %v4744_v0  ;;  %4482 = vmatprep.mubr.msk.bf16.mxu0 %vm4745_vm0, %v4744_v0 }
 0x195   :  { %4291 = vmatpush3.bf16.msra.mxu1 %v1667_v26  ;;  %v489_v26 = vmax.f32 %v373_v21, 0.0 }
 0x196   :  { %4296 = vmatprep.subr.bf16.mxu1 %v4744_v0  ;;  %4479 = vmatpush3.bf16.msra.mxu0 %v4707_v36  ;;  %v5474_v36 = vpop.f32.mrb[78].mxu0 }
 0x197   :  { %4480 = vmatprep.subr.bf16.mxu0 %v4744_v0  ;;  %v3834_v37 = vpack.c.bf16 %v489_v26, %v489_v26 }
 0x198   :  { %4293 = vmatmul.mubr.msk.bf16.vlgmr.msra.gmra.mrb[52].mxu1 %vm865_vm3, %v3830_v38  ;;  %v4668_v38 = vld [vmem:[%s5830_s3 + $0x17c] sm:$0xff]  }
 0x199   :  { %4297 = vmatpush3.bf16.msra.mxu1 %v4656_v35  ;;  %4302 = vmatprep.mubr.msk.bf16.mxu1 %vm4745_vm0, %v4744_v0  ;;  %v4151_v35 = vpop.f32.mrb[79].mxu0 }
 0x19a   :  { %4298 = vmatprep.subr.bf16.mxu1 %v4744_v0  ;;  %4481 = vmatpush3.bf16.msra.mxu0 %v2826_v40  ;;  %v510_v40 = vmax.f32 %v458_v31, 0.0  ;;  %v465_v42 = vpop.f32.mrb[80].mxu0  ;;  %v4688_v31 = vld [vmem:[%s5830_s3 + $0x1fc] sm:$0xff]  }
 0x19b   :  { %4496 = vmatprep.subr.bf16.mxu0 %v4744_v0  ;;  %v4154_v44 = vpop.f32.mrb[81].mxu0 }
 0x19c   :  { %v4692_v44 = vld [vmem:[%s5830_s3 + $0x21c] sm:$0xff]  }
 0x19d   :  { %4299 = vmatpush3.bf16.msra.mxu1 %v4657_v45  ;;  %4483 = vmatmul.mubr.msk.bf16.vlgmr.msra.gmra.mrb[116].mxu0 %vm865_vm3, %v3849_v47  ;;  %v381_v45 = vadd.f32 %v4964_v39, %v5114_v7  ;;  %v4672_v47 = vld [vmem:[%s5830_s3 + $0x18c] ss:$0 sps:$4 sm:$0x33]   ;;  %v4729_v39 = vld [vmem:[%s5830_s3 + $0x320] sm:$0xff]  }
 0x19e   :  { %4300 = vmatprep.subr.bf16.mxu1 %v4744_v0  ;;  %4497 = vmatpush3.bf16.msra.mxu0 %v4711_v43  ;;  %v3855_v43 = vpack.c.bf16 %v510_v40, %v510_v40  ;;  %v2033_v48 = vand.u32 %v4672_v47, %v4899_v25  ;;  %v4694_v47 = vld [vmem:[%s5830_s3 + $0x224] sm:$0xff]  }
 0x19f   :  { %4498 = vmatprep.subr.bf16.mxu0 %v4744_v0  ;;  %4502 = vmatprep.mubr.msk.bf16.mxu0 %vm4745_vm0, %v4744_v0  ;;  %v491_v7 = vmax.f32 %v381_v45, 0.0 }
 0x1a1   :  { %4301 = vmatpush3.bf16.msra.mxu1 %v1728_v49  ;;  %v5513_v49 = vld [vmem:[%s5831_s2] ss:$0 sm:$0xff] }
 0x1a2   :  { %4306 = vmatprep.subr.bf16.mxu1 %v4744_v0  ;;  %4499 = vmatpush3.bf16.msra.mxu0 %v4713_v53  ;;  %v466_v52 = vadd.f32 %v5513_v49, %v465_v42  ;;  %v5516_v53 = vpop.f32.mrb[82].mxu0  ;;  %v389_v62 = vadd.f32 %v5513_v49, %v5141_v28  ;;  %v2155_v28 = vand.u32 %v4678_v1, %v4899_v25 }
 0x1a3   :  { %4500 = vmatprep.subr.bf16.mxu0 %v4744_v0  ;;  %v397_v12 = vadd.f32 %v5513_v49, %v5178_v50 }
 0x1a4   :  { %4303 = vmatmul.mubr.msk.bf16.vlgmr.msra.gmra.mrb[56].mxu1 %vm865_vm3, %v3831_v57  ;;  %v4155_v57 = vpop.f32.mrb[83].mxu0  ;;  %v493_v34 = vmax.f32 %v389_v62, 0.0  ;;  %v4702_v62 = vld [vmem:[%s5830_s3 + $0x254] ss:$0 sps:$4 sm:$0x33]  }
 0x1a5   :  { %4307 = vmatpush3.bf16.msra.mxu1 %v4659_v58  ;;  %4312 = vmatprep.mubr.msk.bf16.mxu1 %vm4745_vm0, %v4744_v0  ;;  %v3836_v58 = vpack.c.bf16 %v491_v7, %v491_v7  ;;  %v2643_v1 = vand.u32 %v4702_v62, %v4899_v25  ;;  %v453_v62 = vadd.f32 %v5513_v49, %v5437_v8 }
 0x1a6   :  { %4308 = vmatprep.subr.bf16.mxu1 %v4744_v0  ;;  %4501 = vmatpush3.bf16.msra.mxu0 %v2948_v60  ;;  %v512_v60 = vmax.f32 %v466_v52, 0.0 }
 0x1a7   :  { %4516 = vmatprep.subr.bf16.mxu0 %v4744_v0  ;;  %v509_v8 = vmax.f32 %v453_v62, 0.0 }
 0x1a9   :  { %4309 = vmatpush3.bf16.msra.mxu1 %v4660_v63  ;;  %4503 = vmatmul.mubr.msk.bf16.vlgmr.msra.gmra.mrb[120].mxu0 %vm865_vm3, %v3851_v2  ;;  %v4676_v63 = vld [vmem:[%s5830_s3 + $0x1ac] sm:$0xff]   ;;  %v3857_v2 = vpack.c.bf16 %v512_v60, %v512_v60  ;;  %v421_v60 = vadd.f32 %v5513_v49, %v5289_v51 }
 0x1aa   :  { %4310 = vmatprep.subr.bf16.mxu1 %v4744_v0  ;;  %4517 = vmatpush3.bf16.msra.mxu0 %v4717_v3 }
 0x1ab   :  { %4518 = vmatprep.subr.bf16.mxu0 %v4744_v0  ;;  %4522 = vmatprep.mubr.msk.bf16.mxu0 %vm4745_vm0, %v4744_v0 }
 0x1ad   :  { %4311 = vmatpush3.bf16.msra.mxu1 %v1789_v4  ;;  %v3838_v4 = vpack.c.bf16 %v493_v34, %v493_v34 }
 0x1ae   :  { %4326 = vmatprep.subr.bf16.mxu1 %v4744_v0  ;;  %4519 = vmatpush3.bf16.msra.mxu0 %v4719_v46  ;;  %v4680_v46 = vld [vmem:[%s5830_s3 + $0x1cc] sm:$0xff]  }
 0x1af   :  { %4520 = vmatprep.subr.bf16.mxu0 %v4744_v0 }
 0x1b0   :  { %4313 = vmatmul.mubr.msk.bf16.vlgmr.msra.gmra.mrb[60].mxu1 %vm865_vm3, %v3832_v16  ;;  %v495_v16 = vmax.f32 %v397_v12, 0.0  ;;  %v4708_v12 = vld [vmem:[%s5830_s3 + $0x27c] ss:$0 sps:$4 sm:$0x33]  }
 0x1b1   :  { %4327 = vmatpush3.bf16.msra.mxu1 %v4662_v13  ;;  %4332 = vmatprep.mubr.msk.bf16.mxu1 %vm4745_vm0, %v4744_v0  ;;  %v4682_v13 = vld [vmem:[%s5830_s3 + $0x1d4] sm:$0xff]  }
 0x1b2   :  { %4328 = vmatprep.subr.bf16.mxu1 %v4744_v0  ;;  %4521 = vmatpush3.bf16.msra.mxu0 %v3070_v17  ;;  %v2277_v17 = vand.u32 %v4684_v14, %v4899_v25  ;;  %v3840_v20 = vpack.c.bf16 %v495_v16, %v495_v16  ;;  %v2765_v14 = vand.u32 %v4708_v12, %v4899_v25 }
 0x1b3   :  { %4536 = vmatprep.subr.bf16.mxu0 %v4744_v0 }
 0x1b5   :  { %4329 = vmatpush3.bf16.msra.mxu1 %v4664_v22  ;;  %4523 = vmatmul.mubr.msk.bf16.vlgmr.msra.gmra.mrb[124].mxu0 %vm865_vm3, %v3853_v24 }
 0x1b6   :  { %4330 = vmatprep.subr.bf16.mxu1 %v4744_v0  ;;  %4537 = vmatpush3.bf16.msra.mxu0 %v4723_v55  ;;  %v4686_v55 = vld [vmem:[%s5830_s3 + $0x1f4] sm:$0xff]  }
 0x1b7   :  { %4538 = vmatprep.subr.bf16.mxu0 %v4744_v0  ;;  %4542 = vmatprep.mubr.msk.bf16.mxu0 %vm4745_vm0, %v4744_v0 }
 0x1b9   :  { %4331 = vmatpush3.bf16.msra.mxu1 %v1911_v9  ;;  %v405_v9 = vadd.f32 %v5513_v49, %v5215_v5 }
 0x1ba   :  { %4346 = vmatprep.subr.bf16.mxu1 %v4744_v0  ;;  %4539 = vmatpush3.bf16.msra.mxu0 %v4725_v32  ;;  %v4690_v32 = vld [vmem:[%s5830_s3 + $0x204] ss:$0 sps:$4 sm:$0x33]  }
 0x1bb   :  { %4540 = vmatprep.subr.bf16.mxu0 %v4744_v0  ;;  %v497_v33 = vmax.f32 %v405_v9, 0.0  ;;  %v2399_v35 = vand.u32 %v4690_v32, %v4899_v25  ;;  %v4714_v9 = vld [vmem:[%s5830_s3 + $0x2a4] ss:$0 sps:$4 sm:$0x33]  }
 0x1bc   :  { %4333 = vmatmul.mubr.msk.bf16.vlgmr.msra.gmra.mrb[64].mxu1 %vm865_vm3, %v3834_v37 }
 0x1bd   :  { %4347 = vmatpush3.bf16.msra.mxu1 %v4668_v38  ;;  %4352 = vmatprep.mubr.msk.bf16.mxu1 %vm4745_vm0, %v4744_v0  ;;  %v3842_v37 = vpack.c.bf16 %v497_v33, %v497_v33 }
 0x1be   :  { %4348 = vmatprep.subr.bf16.mxu1 %v4744_v0  ;;  %4541 = vmatpush3.bf16.msra.mxu0 %v3192_v41 }
 0x1bf   :  { %4556 = vmatprep.subr.bf16.mxu0 %v4744_v0 }
 0x1c1   :  { %4349 = vmatpush3.bf16.msra.mxu1 %v4670_v15  ;;  %4543 = vmatmul.mubr.msk.bf16.vlgmr.msra.gmra.mrb[128].mxu0 %vm865_vm3, %v3855_v43  ;;  %v413_v15 = vadd.f32 %v5513_v49, %v5252_v29  ;;  %v4696_v43 = vld [vmem:[%s5830_s3 + $0x22c] ss:$0 sps:$4 sm:$0x33]  }
 0x1c2   :  { %4350 = vmatprep.subr.bf16.mxu1 %v4744_v0  ;;  %4557 = vmatpush3.bf16.msra.mxu0 %v4729_v39  ;;  %v2521_v7 = vand.u32 %v4696_v43, %v4899_v25  ;;  %v4720_v43 = vld [vmem:[%s5830_s3 + $0x2cc] ss:$0 sps:$4 sm:$0x33]  }
 0x1c3   :  { %4558 = vmatprep.subr.bf16.mxu0 %v4744_v0  ;;  %4562 = vmatprep.mubr.msk.bf16.mxu0 %vm4745_vm0, %v4744_v0  ;;  %v499_v39 = vmax.f32 %v413_v15, 0.0 }
 0x1c5   :  { %4351 = vmatpush3.bf16.msra.mxu1 %v2033_v48  ;;  %v3844_v48 = vpack.c.bf16 %v499_v39, %v499_v39 }
 0x1c6   :  { %4366 = vmatprep.subr.bf16.mxu1 %v4744_v0  ;;  %4559 = vmatpush3.bf16.msra.mxu0 %v4731_v54 }
 0x1c7   :  { %4560 = vmatprep.subr.bf16.mxu0 %v4744_v0 }
 0x1c8   :  { %4353 = vmatmul.mubr.msk.bf16.vlgmr.msra.gmra.mrb[68].mxu1 %vm865_vm3, %v3836_v58  ;;  %v4698_v58 = vld [vmem:[%s5830_s3 + $0x244] sm:$0xff]  }
 0x1c9   :  { %4367 = vmatpush3.bf16.msra.mxu1 %v4674_v59  ;;  %4372 = vmatprep.mubr.msk.bf16.mxu1 %vm4745_vm0, %v4744_v0 }
 0x1ca   :  { %4368 = vmatprep.subr.bf16.mxu1 %v4744_v0  ;;  %4561 = vmatpush3.bf16.msra.mxu0 %v3314_v61  ;;  %v4700_v61 = vld [vmem:[%s5830_s3 + $0x24c] sm:$0xff]  }
 0x1cd   :  { %4369 = vmatpush3.bf16.msra.mxu1 %v4676_v63  ;;  %4563 = vmatmul.mubr.msk.bf16.vlgmr.msra.gmra.mrb[132].mxu0 %vm865_vm3, %v3857_v2  ;;  %v501_v63 = vmax.f32 %v421_v60, 0.0  ;;  %v4722_v60 = vld [vmem:[%s5830_s3 + $0x2e4] sm:$0xff]  }
 0x1ce   :  { %4370 = vmatprep.subr.bf16.mxu1 %v4744_v0 }
 0x1cf   :  { %v910_v3 = vpop.f32.mrb[0].mxu1  ;;  %v3846_v2 = vpack.c.bf16 %v501_v63, %v501_v63 }
 0x1d0   :  { %v4164_v6 = vpop.f32.mrb[1].mxu1  ;;  %v3418_v19 = vsel %vm3417_vm4, %v910_v3, 0.0 }
 0x1d1   :  { %4371 = vmatpush3.bf16.msra.mxu1 %v2155_v28  ;;  %v913_v10 = vpop.f32.mrb[2].mxu1  ;;  %v4704_v6 = vld [vmem:[%s5830_s3 + $0x26c] sm:$0xff]  }
 0x1d2   :  { %v4165_v11 = vpop.f32.mrb[3].mxu1  ;;  %4386 = vmatprep.subr.bf16.mxu1 %v4744_v0 }
 0x1d3   :  { %v4706_v11 = vld [vmem:[%s5830_s3 + $0x274] sm:$0xff]  }
 0x1d4   :  { %4373 = vmatmul.mubr.msk.bf16.vlgmr.msra.gmra.mrb[72].mxu1 %vm865_vm3, %v3838_v4 }
 0x1d5   :  { %4387 = vmatpush3.bf16.msra.mxu1 %v4680_v46  ;;  %4392 = vmatprep.mubr.msk.bf16.mxu1 %vm4745_vm0, %v4744_v0  ;;  %v429_v46 = vadd.f32 %v5513_v49, %v5326_v18 }
 0x1d6   :  { %4388 = vmatprep.subr.bf16.mxu1 %v4744_v0 }
 0x1d9   :  { %4389 = vmatpush3.bf16.msra.mxu1 %v4682_v13  ;;  %v503_v13 = vmax.f32 %v429_v46, 0.0 }
 0x1da   :  { %4390 = vmatprep.subr.bf16.mxu1 %v4744_v0 }
 0x1db   :  { %v971_v50 = vpop.f32.mrb[4].mxu1  ;;  %v3848_v16 = vpack.c.bf16 %v503_v13, %v503_v13 }
 0x1dc   :  { %v3419_v21 = vsel %vm3417_vm4, %v971_v50, 0.0  ;;  %v4174_v22 = vpop.f32.mrb[5].mxu1 }
 0x1dd   :  { %v3420_v23 = vadd.f32 %v3419_v21, %v3418_v19  ;;  %v974_v24 = vpop.f32.mrb[6].mxu1  ;;  %4391 = vmatpush3.bf16.msra.mxu1 %v2277_v17  ;;  %v4710_v21 = vld [vmem:[%s5830_s3 + $0x294] sm:$0xff]  }
 0x1de   :  { %v4175_v26 = vpop.f32.mrb[7].mxu1  ;;  %4406 = vmatprep.subr.bf16.mxu1 %v4744_v0  ;;  %v437_v24 = vadd.f32 %v5513_v49, %v5363_v30  ;;  %v2887_v30 = vand.u32 %v4714_v9, %v4899_v25 }
 0x1df   :  { %v4712_v26 = vld [vmem:[%s5830_s3 + $0x29c] sm:$0xff]  }
 0x1e0   :  { %4393 = vmatmul.mubr.msk.bf16.vlgmr.msra.gmra.mrb[76].mxu1 %vm865_vm3, %v3840_v20  ;;  %v505_v33 = vmax.f32 %v437_v24, 0.0 }
 0x1e1   :  { %4407 = vmatpush3.bf16.msra.mxu1 %v4686_v55  ;;  %4412 = vmatprep.mubr.msk.bf16.mxu1 %vm4745_vm0, %v4744_v0 }
 0x1e2   :  { %4408 = vmatprep.subr.bf16.mxu1 %v4744_v0 }
 0x1e5   :  { %4409 = vmatpush3.bf16.msra.mxu1 %v4688_v31 }
 0x1e6   :  { %4410 = vmatprep.subr.bf16.mxu1 %v4744_v0 }
 0x1e7   :  { %v1032_v5 = vpop.f32.mrb[8].mxu1 }
 0x1e8   :  { %v3421_v38 = vsel %vm3417_vm4, %v1032_v5, 0.0  ;;  %v4184_v40 = vpop.f32.mrb[9].mxu1  ;;  %v3850_v5 = vpack.c.bf16 %v505_v33, %v505_v33 }
 0x1e9   :  { %v3422_v41 = vadd.f32 %v3421_v38, %v3420_v23  ;;  %v1035_v42 = vpop.f32.mrb[10].mxu1  ;;  %4411 = vmatpush3.bf16.msra.mxu1 %v2399_v35 }
 0x1ea   :  { %v4185_v45 = vpop.f32.mrb[11].mxu1  ;;  %4426 = vmatprep.subr.bf16.mxu1 %v4744_v0  ;;  %v4716_v42 = vld [vmem:[%s5830_s3 + $0x2bc] sm:$0xff]  }
 0x1eb   :  { %v445_v45 = vadd.f32 %v5513_v49, %v5400_v27 }
 0x1ec   :  { %4413 = vmatmul.mubr.msk.bf16.vlgmr.msra.gmra.mrb[80].mxu1 %vm865_vm3, %v3842_v37 }
 0x1ed   :  { %4427 = vmatpush3.bf16.msra.mxu1 %v4692_v44  ;;  %4432 = vmatprep.mubr.msk.bf16.mxu1 %vm4745_vm0, %v4744_v0  ;;  %v507_v27 = vmax.f32 %v445_v45, 0.0 }
 0x1ee   :  { %4428 = vmatprep.subr.bf16.mxu1 %v4744_v0 }
 0x1f1   :  { %4429 = vmatpush3.bf16.msra.mxu1 %v4694_v47  ;;  %v4718_v47 = vld [vmem:[%s5830_s3 + $0x2c4] sm:$0xff]  }
 0x1f2   :  { %4430 = vmatprep.subr.bf16.mxu1 %v4744_v0 }
 0x1f3   :  { %v1093_v29 = vpop.f32.mrb[12].mxu1 }
 0x1f4   :  { %v3423_v52 = vsel %vm3417_vm4, %v1093_v29, 0.0  ;;  %v4194_v54 = vpop.f32.mrb[13].mxu1 }
 0x1f5   :  { %v3424_v56 = vadd.f32 %v3423_v52, %v3422_v41  ;;  %v1096_v57 = vpop.f32.mrb[14].mxu1  ;;  %4431 = vmatpush3.bf16.msra.mxu1 %v2521_v7  ;;  %v3852_v54 = vpack.c.bf16 %v507_v27, %v507_v27 }
 0x1f6   :  { %v4195_v59 = vpop.f32.mrb[15].mxu1  ;;  %4446 = vmatprep.subr.bf16.mxu1 %v4744_v0 }
 0x1f8   :  { %4433 = vmatmul.mubr.msk.bf16.vlgmr.msra.gmra.mrb[84].mxu1 %vm865_vm3, %v3844_v48  ;;  %v3009_v48 = vand.u32 %v4720_v43, %v4899_v25 }
 0x1f9   :  { %4447 = vmatpush3.bf16.msra.mxu1 %v4698_v58  ;;  %4452 = vmatprep.mubr.msk.bf16.mxu1 %vm4745_vm0, %v4744_v0 }
 0x1fa   :  { %4448 = vmatprep.subr.bf16.mxu1 %v4744_v0 }
 0x1fd   :  { %4449 = vmatpush3.bf16.msra.mxu1 %v4700_v61 }
 0x1fe   :  { %4450 = vmatprep.subr.bf16.mxu1 %v4744_v0 }
 0x1ff   :  { %v1154_v51 = vpop.f32.mrb[16].mxu1 }
 0x200   :  { %v3425_v34 = vsel %vm3417_vm4, %v1154_v51, 0.0  ;;  %v4204_v28 = vpop.f32.mrb[17].mxu1  ;;  %v4726_v51 = vld [vmem:[%s5830_s3 + $0x2f4] ss:$0 sps:$4 sm:$0x33]  }
 0x201   :  { %v3426_v3 = vadd.f32 %v3425_v34, %v3424_v56  ;;  %v1157_v4 = vpop.f32.mrb[18].mxu1  ;;  %4451 = vmatpush3.bf16.msra.mxu1 %v2643_v1  ;;  %v4724_v1 = vld [vmem:[%s5830_s3 + $0x2ec] sm:$0xff]  }
 0x202   :  { %v4205_v10 = vpop.f32.mrb[19].mxu1  ;;  %4466 = vmatprep.subr.bf16.mxu1 %v4744_v0  ;;  %v3131_v4 = vand.u32 %v4726_v51, %v4899_v25 }
 0x203   :  { %v3854_v10 = vpack.c.bf16 %v509_v8, %v509_v8 }
 0x204   :  { %4453 = vmatmul.mubr.msk.bf16.vlgmr.msra.gmra.mrb[88].mxu1 %vm865_vm3, %v3846_v2 }
 0x205   :  { %4467 = vmatpush3.bf16.msra.mxu1 %v4704_v6  ;;  %4472 = vmatprep.mubr.msk.bf16.mxu1 %vm4745_vm0, %v4744_v0 }
 0x206   :  { %4468 = vmatprep.subr.bf16.mxu1 %v4744_v0 }
 0x209   :  { %4469 = vmatpush3.bf16.msra.mxu1 %v4706_v11 }
 0x20a   :  { %4470 = vmatprep.subr.bf16.mxu1 %v4744_v0 }
 0x20b   :  { %v1215_v18 = vpop.f32.mrb[20].mxu1 }
 0x20c   :  { %v3427_v17 = vsel %vm3417_vm4, %v1215_v18, 0.0  ;;  %v4214_v50 = vpop.f32.mrb[21].mxu1 }
 0x20d   :  { %v3428_v19 = vadd.f32 %v3427_v17, %v3426_v3  ;;  %v1218_v20 = vpop.f32.mrb[22].mxu1  ;;  %4471 = vmatpush3.bf16.msra.mxu1 %v2765_v14  ;;  %v3816_v3 = vld [vmem:[%s5832_s7] ss:$0 sm:$0xff]  ;;  %v4728_v14 = vld [vmem:[%s5830_s3 + $0x30c] sm:$0xff]   ;;  %v4730_v50 = vld [vmem:[%s5830_s3 + $0x314] sm:$0xff]  }
 0x20e   :  { %v4215_v22 = vpop.f32.mrb[23].mxu1  ;;  %4486 = vmatprep.subr.bf16.mxu1 %v4744_v0  ;;  %3537 = vrot.lane.b32.xlu0 %v3816_v3, %s4747_s20 }
 0x20f   :  { %v5649_v23 = vpop.f32.mrb[84].mxu0 }
 0x210   :  { %4473 = vmatmul.mubr.msk.bf16.vlgmr.msra.gmra.mrb[92].mxu1 %vm865_vm3, %v3848_v16  ;;  %v4324_v55 = vpop.f32.mrb[85].mxu0  ;;  %v461_v16 = vadd.f32 %v5513_v49, %v5474_v36 }
 0x211   :  { %4487 = vmatpush3.bf16.msra.mxu1 %v4710_v21  ;;  %4492 = vmatprep.mubr.msk.bf16.mxu1 %vm4745_vm0, %v4744_v0  ;;  %v1889_v31 = vpop.f32.mrb[86].mxu0 }
 0x212   :  { %4488 = vmatprep.subr.bf16.mxu1 %v4744_v0  ;;  %v4325_v32 = vpop.f32.mrb[87].mxu0  ;;  %v511_v36 = vmax.f32 %v461_v16, 0.0 }
 0x215   :  { %4489 = vmatpush3.bf16.msra.mxu1 %v4712_v26  ;;  %v3856_v26 = vpack.c.bf16 %v511_v36, %v511_v36 }
 0x216   :  { %4490 = vmatprep.subr.bf16.mxu1 %v4744_v0 }
 0x217   :  { %v1276_v35 = vpop.f32.mrb[24].mxu1 }
 0x218   :  { %v3429_v37 = vsel %vm3417_vm4, %v1276_v35, 0.0  ;;  %v4224_v38 = vpop.f32.mrb[25].mxu1 }
 0x219   :  { %v3430_v40 = vadd.f32 %v3429_v37, %v3428_v19  ;;  %v1279_v41 = vpop.f32.mrb[26].mxu1  ;;  %4491 = vmatpush3.bf16.msra.mxu1 %v2887_v30  ;;  %v4732_v19 = vld [vmem:[%s5830_s3 + $0x31c] ss:$0 sps:$4 sm:$0x33]   ;;  %v4734_v30 = vld [vmem:[%s5830_s3 + $0x334] sm:$0xff]  }
 0x21a   :  { %v4225_v44 = vpop.f32.mrb[27].mxu1  ;;  %4506 = vmatprep.subr.bf16.mxu1 %v4744_v0  ;;  %v3253_v24 = vand.u32 %v4732_v19, %v4899_v25  ;;  %v4735_v37 = vld [vmem:[%s5830_s3 + $0x33c] sm:$0xff]   ;;  %v4736_v38 = vld [vmem:[%s5830_s3 + $0x344] ss:$0 sps:$4 sm:$0x33]   ;;  %v469_v41 = vadd.f32 %v5513_v49, %v5516_v53 }
 0x21b   :  { %v3375_v45 = vand.u32 %v4736_v38, %v4899_v25 }
 0x21c   :  { %4493 = vmatmul.mubr.msk.bf16.vlgmr.msra.gmra.mrb[96].mxu1 %vm865_vm3, %v3850_v5  ;;  %v5673_v15 = vpop.f32.mrb[88].mxu0 }
 0x21d   :  { %4507 = vmatpush3.bf16.msra.mxu1 %v4716_v42  ;;  %4512 = vmatprep.mubr.msk.bf16.mxu1 %vm4745_vm0, %v4744_v0  ;;  %v4344_v39 = vpop.f32.mrb[89].mxu0 }
 0x21e   :  { %4508 = vmatprep.subr.bf16.mxu1 %v4744_v0  ;;  %v2011_v7 = vpop.f32.mrb[90].mxu0 }
 0x21f   :  { %v4345_v29 = vpop.f32.mrb[91].mxu0 }
 0x221   :  { %4509 = vmatpush3.bf16.msra.mxu1 %v4718_v47  ;;  %v513_v47 = vmax.f32 %v469_v41, 0.0  ;;  %v3449_v41 = vsel %vm3417_vm4, %v5649_v23, 0.0 }
 0x222   :  { %4510 = vmatprep.subr.bf16.mxu1 %v4744_v0 }
 0x223   :  { %v1337_v52 = vpop.f32.mrb[28].mxu1 }
 0x224   :  { %v3431_v56 = vsel %vm3417_vm4, %v1337_v52, 0.0  ;;  %v4234_v57 = vpop.f32.mrb[29].mxu1 }
 0x225   :  { %v3432_v58 = vadd.f32 %v3431_v56, %v3430_v40  ;;  %v1340_v59 = vpop.f32.mrb[30].mxu1  ;;  %4511 = vmatpush3.bf16.msra.mxu1 %v3009_v48  ;;  %v3858_v48 = vpack.c.bf16 %v513_v47, %v513_v47 }
 0x226   :  { %v4235_v61 = vpop.f32.mrb[31].mxu1  ;;  %4526 = vmatprep.subr.bf16.mxu1 %v4744_v0 }
 0x228   :  { %4513 = vmatmul.mubr.msk.bf16.vlgmr.msra.gmra.mrb[100].mxu1 %vm865_vm3, %v3852_v54  ;;  %v5694_v63 = vpop.f32.mrb[92].mxu0 }
 0x229   :  { %4527 = vmatpush3.bf16.msra.mxu1 %v4722_v60  ;;  %4532 = vmatprep.mubr.msk.bf16.mxu1 %vm4745_vm0, %v4744_v0  ;;  %v4364_v2 = vpop.f32.mrb[93].mxu0 }
 0x22a   :  { %4528 = vmatprep.subr.bf16.mxu1 %v4744_v0  ;;  %v2133_v34 = vpop.f32.mrb[94].mxu0 }
 0x22b   :  { %v4365_v28 = vpop.f32.mrb[95].mxu0 }
 0x22d   :  { %4529 = vmatpush3.bf16.msra.mxu1 %v4724_v1 }
 0x22e   :  { %4530 = vmatprep.subr.bf16.mxu1 %v4744_v0 }
 0x22f   :  { %v1398_v6 = vpop.f32.mrb[32].mxu1 }
 0x230   :  { %v3433_v46 = vsel %vm3417_vm4, %v1398_v6, 0.0  ;;  %v4244_v11 = vpop.f32.mrb[33].mxu1 }
 0x231   :  { %v3434_v12 = vadd.f32 %v3433_v46, %v3432_v58  ;;  %v1401_v13 = vpop.f32.mrb[34].mxu1  ;;  %4531 = vmatpush3.bf16.msra.mxu1 %v3131_v4 }
 0x232   :  { %v4245_v18 = vpop.f32.mrb[35].mxu1  ;;  %4546 = vmatprep.subr.bf16.mxu1 %v4744_v0 }
 0x234   :  { %4533 = vmatmul.mubr.msk.bf16.vlgmr.msra.gmra.mrb[104].mxu1 %vm865_vm3, %v3854_v10  ;;  %v5718_v17 = vpop.f32.mrb[96].mxu0 }
 0x235   :  { %4547 = vmatpush3.bf16.msra.mxu1 %v4728_v14  ;;  %4552 = vmatprep.mubr.msk.bf16.mxu1 %vm4745_vm0, %v4744_v0  ;;  %v4384_v20 = vpop.f32.mrb[97].mxu0 }
 0x236   :  { %4548 = vmatprep.subr.bf16.mxu1 %v4744_v0  ;;  %v2255_v21 = vpop.f32.mrb[98].mxu0 }
 0x237   :  { %v4385_v22 = vpop.f32.mrb[99].mxu0 }
 0x239   :  { %4549 = vmatpush3.bf16.msra.mxu1 %v4730_v50 }
 0x23a   :  { %4550 = vmatprep.subr.bf16.mxu1 %v4744_v0 }
 0x23b   :  { %v1459_v55 = vpop.f32.mrb[36].mxu1 }
 0x23c   :  { %v3435_v9 = vsel %vm3417_vm4, %v1459_v55, 0.0  ;;  %v4254_v31 = vpop.f32.mrb[37].mxu1 }
 0x23d   :  { %v3436_v32 = vadd.f32 %v3435_v9, %v3434_v12  ;;  %v1462_v33 = vpop.f32.mrb[38].mxu1  ;;  %4551 = vmatpush3.bf16.msra.mxu1 %v3253_v24 }
 0x23e   :  { %v4255_v35 = vpop.f32.mrb[39].mxu1  ;;  %4566 = vmatprep.subr.bf16.mxu1 %v4744_v0 }
 0x240   :  { %4553 = vmatmul.mubr.msk.bf16.vlgmr.msra.gmra.mrb[108].mxu1 %vm865_vm3, %v3856_v26  ;;  %v5737_v5 = vpop.f32.mrb[100].mxu0 }
 0x241   :  { %4567 = vmatpush3.bf16.msra.mxu1 %v4734_v30  ;;  %4572 = vmatprep.mubr.msk.bf16.mxu1 %vm4745_vm0, %v4744_v0  ;;  %v4404_v40 = vpop.f32.mrb[101].mxu0 }
 0x242   :  { %4568 = vmatprep.subr.bf16.mxu1 %v4744_v0  ;;  %v2377_v42 = vpop.f32.mrb[102].mxu0 }
 0x243   :  { %v4405_v44 = vpop.f32.mrb[103].mxu0 }
 0x245   :  { %4569 = vmatpush3.bf16.msra.mxu1 %v4735_v37 }
 0x246   :  { %4570 = vmatprep.subr.bf16.mxu1 %v4744_v0 }
 0x247   :  { %v1520_v43 = vpop.f32.mrb[40].mxu1 }
 0x248   :  { %v3437_v39 = vsel %vm3417_vm4, %v1520_v43, 0.0  ;;  %v4264_v7 = vpop.f32.mrb[41].mxu1 }
 0x249   :  { %v3438_v29 = vadd.f32 %v3437_v39, %v3436_v32  ;;  %v1523_v27 = vpop.f32.mrb[42].mxu1  ;;  %4571 = vmatpush3.bf16.msra.mxu1 %v3375_v45 }
 0x24a   :  { %v4265_v52 = vpop.f32.mrb[43].mxu1 }
 0x24c   :  { %4573 = vmatmul.mubr.msk.bf16.vlgmr.msra.gmra.mrb[112].mxu1 %vm865_vm3, %v3858_v48  ;;  %v5754_v49 = vpop.f32.mrb[104].mxu0 }
 0x24d   :  { %v4424_v53 = vpop.f32.mrb[105].mxu0 }
 0x24e   :  { %v2499_v54 = vpop.f32.mrb[106].mxu0  ;;  %v3453_v53 = vsel %vm3417_vm4, %v5673_v15, 0.0 }
 0x24f   :  { %v4425_v56 = vpop.f32.mrb[107].mxu0 }
 0x253   :  { %v1581_v25 = vpop.f32.mrb[44].mxu1 }
 0x254   :  { %v3439_v57 = vsel %vm3417_vm4, %v1581_v25, 0.0  ;;  %v4274_v0 = vpop.f32.mrb[45].mxu1 }
 0x255   :  { %v3440_v58 = vadd.f32 %v3439_v57, %v3438_v29  ;;  %v1584_v59 = vpop.f32.mrb[46].mxu1 }
 0x256   :  { %v4275_v60 = vpop.f32.mrb[47].mxu1 }
 0x258   :  { %v5757_v61 = vpop.f32.mrb[108].mxu0 }
 0x259   :  { %v4444_v62 = vpop.f32.mrb[109].mxu0 }
 0x25a   :  { %v2621_v1 = vpop.f32.mrb[110].mxu0 }
 0x25b   :  { %v4445_v51 = vpop.f32.mrb[111].mxu0 }
 0x25c   :  { %v3457_v51 = vsel %vm3417_vm4, %v5694_v63, 0.0 }
 0x25f   :  { %v1642_v2 = vpop.f32.mrb[48].mxu1 }
 0x260   :  { %v3441_v34 = vsel %vm3417_vm4, %v1642_v2, 0.0  ;;  %v4284_v28 = vpop.f32.mrb[49].mxu1 }
 0x261   :  { %v3442_v8 = vadd.f32 %v3441_v34, %v3440_v58  ;;  %v1645_v3 = vpop.f32.mrb[50].mxu1 }
 0x262   :  { %v4285_v4 = vpop.f32.mrb[51].mxu1 }
 0x264   :  { %v5760_v6 = vpop.f32.mrb[112].mxu0 }
 0x265   :  { %v4464_v10 = vpop.f32.mrb[113].mxu0 }
 0x266   :  { %v2743_v46 = vpop.f32.mrb[114].mxu0 }
 0x267   :  { %v4465_v11 = vpop.f32.mrb[115].mxu0 }
 0x26b   :  { %v1703_v12 = vpop.f32.mrb[52].mxu1 }
 0x26c   :  { %v3443_v13 = vsel %vm3417_vm4, %v1703_v12, 0.0  ;;  %v4294_v14 = vpop.f32.mrb[53].mxu1 }
 0x26d   :  { %v3444_v18 = vadd.f32 %v3443_v13, %v3442_v8  ;;  %v1706_v16 = vpop.f32.mrb[54].mxu1  ;;  %v3461_v13 = vsel %vm3417_vm4, %v5718_v17, 0.0  ;;  %v3469_v17 = vsel %vm3417_vm4, %v5754_v49, 0.0  ;;  %v3477_v49 = vsel %vm3417_vm4, %v5760_v6, 0.0 }
 0x26e   :  { %v4295_v50 = vpop.f32.mrb[55].mxu1 }
 0x270   :  { %v5763_v19 = vpop.f32.mrb[116].mxu0 }
 0x271   :  { %v4484_v20 = vpop.f32.mrb[117].mxu0 }
 0x272   :  { %v2865_v21 = vpop.f32.mrb[118].mxu0 }
 0x273   :  { %v4485_v22 = vpop.f32.mrb[119].mxu0 }
 0x274   :  { %v3465_v22 = vsel %vm3417_vm4, %v5737_v5, 0.0  ;;  %v3473_v5 = vsel %vm3417_vm4, %v5757_v61, 0.0  ;;  %v3481_v61 = vsel %vm3417_vm4, %v5763_v19, 0.0 }
 0x277   :  { %v1764_v36 = vpop.f32.mrb[56].mxu1 }
 0x278   :  { %v3445_v24 = vsel %vm3417_vm4, %v1764_v36, 0.0  ;;  %v4304_v55 = vpop.f32.mrb[57].mxu1 }
 0x279   :  { %v3446_v26 = vadd.f32 %v3445_v24, %v3444_v18  ;;  %v1767_v9 = vpop.f32.mrb[58].mxu1 }
 0x27a   :  { %v4305_v31 = vpop.f32.mrb[59].mxu1 }
 0x27c   :  { %v5766_v32 = vpop.f32.mrb[120].mxu0 }
 0x27d   :  { %v4504_v33 = vpop.f32.mrb[121].mxu0  ;;  %v3485_v6 = vsel %vm3417_vm4, %v5766_v32, 0.0 }
 0x27e   :  { %v2987_v30 = vpop.f32.mrb[122].mxu0 }
 0x27f   :  { %v4505_v35 = vpop.f32.mrb[123].mxu0 }
 0x283   :  { %v1825_v37 = vpop.f32.mrb[60].mxu1 }
 0x284   :  { %v3447_v38 = vsel %vm3417_vm4, %v1825_v37, 0.0  ;;  %v4314_v40 = vpop.f32.mrb[61].mxu1 }
 0x285   :  { %v3448_v42 = vadd.f32 %v3447_v38, %v3446_v26  ;;  %v1828_v44 = vpop.f32.mrb[62].mxu1 }
 0x286   :  { %v4315_v45 = vpop.f32.mrb[63].mxu1 }
 0x287   :  { %v3450_v47 = vadd.f32 %v3449_v41, %v3448_v42 }
 0x288   :  { %v5771_v43 = vpop.f32.mrb[124].mxu0 }
 0x289   :  { %v4524_v39 = vpop.f32.mrb[125].mxu0  ;;  %v3489_v19 = vsel %vm3417_vm4, %v5771_v43, 0.0 }
 0x28a   :  { %v3109_v7 = vpop.f32.mrb[126].mxu0 }
 0x28b   :  { %v4525_v29 = vpop.f32.mrb[127].mxu0 }
 0x28f   :  { %v1947_v27 = vpop.f32.mrb[64].mxu1 }
 0x290   :  { %v3451_v48 = vsel %vm3417_vm4, %v1947_v27, 0.0  ;;  %v4334_v52 = vpop.f32.mrb[65].mxu1 }
 0x291   :  { %v3452_v54 = vadd.f32 %v3451_v48, %v3450_v47  ;;  %v1950_v56 = vpop.f32.mrb[66].mxu1 }
 0x292   :  { %v4335_v25 = vpop.f32.mrb[67].mxu1 }
 0x293   :  { %v3454_v23 = vadd.f32 %v3453_v53, %v3452_v54 }
 0x294   :  { %v5776_v57 = vpop.f32.mrb[128].mxu0 }
 0x295   :  { %v4544_v0 = vpop.f32.mrb[129].mxu0  ;;  %v3493_v32 = vsel %vm3417_vm4, %v5776_v57, 0.0  ;;  %v3538_v57 = vpop.permute.xlu0 %3537 }
 0x296   :  { %v3231_v58 = vpop.f32.mrb[130].mxu0 }
 0x297   :  { %v4545_v59 = vpop.f32.mrb[131].mxu0 }
 0x29b   :  { %v2069_v60 = vpop.f32.mrb[68].mxu1 }
 0x29c   :  { %v3455_v62 = vsel %vm3417_vm4, %v2069_v60, 0.0  ;;  %v4354_v1 = vpop.f32.mrb[69].mxu1 }
 0x29d   :  { %v3456_v2 = vadd.f32 %v3455_v62, %v3454_v23  ;;  %v2072_v34 = vpop.f32.mrb[70].mxu1 }
 0x29e   :  { %v4355_v28 = vpop.f32.mrb[71].mxu1 }
 0x29f   :  { %v3458_v15 = vadd.f32 %v3457_v51, %v3456_v2 }
 0x2a0   :  { %v5781_v8 = vpop.f32.mrb[132].mxu0 }
 0x2a1   :  { %v4564_v3 = vpop.f32.mrb[133].mxu0  ;;  %v3497_v43 = vsel %vm3417_vm4, %v5781_v8, 0.0  ;;  %v13_v8 = vstv %s5833_s6 }
 0x2a2   :  { %v3353_v4 = vpop.f32.mrb[134].mxu0  ;;  %14 = vst [vmem:[#allocation2] sm:$0x1] %v13_v8 }
 0x2a3   :  { %v4565_v10 = vpop.f32.mrb[135].mxu0 }
 0x2a7   :  { %v2191_v46 = vpop.f32.mrb[72].mxu1 }
 0x2a8   :  { %v3459_v11 = vsel %vm3417_vm4, %v2191_v46, 0.0  ;;  %v4374_v12 = vpop.f32.mrb[73].mxu1 }
 0x2a9   :  { %v3460_v14 = vadd.f32 %v3459_v11, %v3458_v15  ;;  %v2194_v18 = vpop.f32.mrb[74].mxu1 }
 0x2aa   :  { %v4375_v16 = vpop.f32.mrb[75].mxu1 }
 0x2ab   :  { %v3462_v63 = vadd.f32 %v3461_v13, %v3460_v14 }
 0x2b3   :  { %v2313_v50 = vpop.f32.mrb[76].mxu1 }
 0x2b4   :  { %v3463_v20 = vsel %vm3417_vm4, %v2313_v50, 0.0  ;;  %v4394_v21 = vpop.f32.mrb[77].mxu1 }
 0x2b5   :  { %v3464_v36 = vadd.f32 %v3463_v20, %v3462_v63  ;;  %v2316_v24 = vpop.f32.mrb[78].mxu1 }
 0x2b6   :  { %v4395_v55 = vpop.f32.mrb[79].mxu1 }
 0x2b7   :  { %v3466_v26 = vadd.f32 %v3465_v22, %v3464_v36 }
 0x2bf   :  { %v2435_v9 = vpop.f32.mrb[80].mxu1 }
 0x2c0   :  { %v3467_v31 = vsel %vm3417_vm4, %v2435_v9, 0.0  ;;  %v4414_v33 = vpop.f32.mrb[81].mxu1 }
 0x2c1   :  { %v3468_v30 = vadd.f32 %v3467_v31, %v3466_v26  ;;  %v2438_v35 = vpop.f32.mrb[82].mxu1 }
 0x2c2   :  { %v4415_v37 = vpop.f32.mrb[83].mxu1 }
 0x2c3   :  { %v3470_v38 = vadd.f32 %v3469_v17, %v3468_v30 }
 0x2cb   :  { %v2557_v40 = vpop.f32.mrb[84].mxu1 }
 0x2cc   :  { %v3471_v41 = vsel %vm3417_vm4, %v2557_v40, 0.0  ;;  %v4434_v42 = vpop.f32.mrb[85].mxu1 }
 0x2cd   :  { %v3472_v44 = vadd.f32 %v3471_v41, %v3470_v38  ;;  %v2560_v45 = vpop.f32.mrb[86].mxu1 }
 0x2ce   :  { %v4435_v47 = vpop.f32.mrb[87].mxu1 }
 0x2cf   :  { %v3474_v39 = vadd.f32 %v3473_v5, %v3472_v44  ;;  %v3813_v47 = vld [vmem:[%s5834_s4] ss:$0 sm:$0xff]  ;;  %s4749_s4 = smov 7  }
 0x2d7   :  { %v2679_v7 = vpop.f32.mrb[88].mxu1 }
 0x2d8   :  { %v3475_v29 = vsel %vm3417_vm4, %v2679_v7, 0.0  ;;  %v4454_v27 = vpop.f32.mrb[89].mxu1 }
 0x2d9   :  { %v3476_v48 = vadd.f32 %v3475_v29, %v3474_v39  ;;  %v2682_v52 = vpop.f32.mrb[90].mxu1  ;;  %v3814_v29 = vld [vmem:[%s5835_s5] ss:$0 sm:$0xff] }
 0x2da   :  { %v4455_v53 = vpop.f32.mrb[91].mxu1 }
 0x2db   :  { %v3478_v54 = vadd.f32 %v3477_v49, %v3476_v48  ;;  %v3815_v53 = vld [vmem:[#allocation2] ss:$0 sm:$0xff] }
 0x2e3   :  { %v2801_v56 = vpop.f32.mrb[92].mxu1 }
 0x2e4   :  { %v3479_v25 = vsel %vm3417_vm4, %v2801_v56, 0.0  ;;  %v4474_v23 = vpop.f32.mrb[93].mxu1 }
 0x2e5   :  { %v3480_v0 = vadd.f32 %v3479_v25, %v3478_v54  ;;  %v2804_v58 = vpop.f32.mrb[94].mxu1 }
 0x2e6   :  { %v4475_v59 = vpop.f32.mrb[95].mxu1 }
 0x2e7   :  { %v3482_v60 = vadd.f32 %v3481_v61, %v3480_v0 }
 0x2ef   :  { %v2923_v62 = vpop.f32.mrb[96].mxu1 }
 0x2f0   :  { %v3483_v1 = vsel %vm3417_vm4, %v2923_v62, 0.0  ;;  %v4494_v51 = vpop.f32.mrb[97].mxu1 }
 0x2f1   :  { %v3484_v2 = vadd.f32 %v3483_v1, %v3482_v60  ;;  %v2926_v34 = vpop.f32.mrb[98].mxu1 }
 0x2f2   :  { %v4495_v28 = vpop.f32.mrb[99].mxu1 }
 0x2f3   :  { %v3486_v15 = vadd.f32 %v3485_v6, %v3484_v2 }
 0x2fb   :  { %v3045_v3 = vpop.f32.mrb[100].mxu1 }
 0x2fc   :  { %v3487_v4 = vsel %vm3417_vm4, %v3045_v3, 0.0  ;;  %v4514_v10 = vpop.f32.mrb[101].mxu1 }
 0x2fd   :  { %v3488_v46 = vadd.f32 %v3487_v4, %v3486_v15  ;;  %v3048_v11 = vpop.f32.mrb[102].mxu1 }
 0x2fe   :  { %v4515_v12 = vpop.f32.mrb[103].mxu1 }
 0x2ff   :  { %v3490_v13 = vadd.f32 %v3489_v19, %v3488_v46 }
 0x307   :  { %v3167_v14 = vpop.f32.mrb[104].mxu1 }
 0x308   :  { %v3491_v18 = vsel %vm3417_vm4, %v3167_v14, 0.0  ;;  %v4534_v16 = vpop.f32.mrb[105].mxu1 }
 0x309   :  { %v3492_v63 = vadd.f32 %v3491_v18, %v3490_v13  ;;  %v3170_v50 = vpop.f32.mrb[106].mxu1 }
 0x30a   :  { %v4535_v20 = vpop.f32.mrb[107].mxu1 }
 0x30b   :  { %v3494_v21 = vadd.f32 %v3493_v32, %v3492_v63 }
 0x313   :  { %v3289_v22 = vpop.f32.mrb[108].mxu1 }
 0x314   :  { %v3495_v36 = vsel %vm3417_vm4, %v3289_v22, 0.0  ;;  %v4554_v24 = vpop.f32.mrb[109].mxu1 }
 0x315   :  { %v3496_v55 = vadd.f32 %v3495_v36, %v3494_v21  ;;  %v3292_v26 = vpop.f32.mrb[110].mxu1 }
 0x316   :  { %v4555_v9 = vpop.f32.mrb[111].mxu1 }
 0x317   :  { %v3498_v31 = vadd.f32 %v3497_v43, %v3496_v55 }
 0x31f   :  { %v3411_v33 = vpop.f32.mrb[112].mxu1 }
 0x320   :  { %v3499_v17 = vsel %vm3417_vm4, %v3411_v33, 0.0  ;;  %v4574_v30 = vpop.f32.mrb[113].mxu1 }
 0x321   :  { %v3500_v35 = vadd.f32 %v3499_v17, %v3498_v31  ;;  %v3414_v37 = vpop.f32.mrb[114].mxu1 }
 0x322   :  { %v4575_v38 = vpop.f32.mrb[115].mxu1 }
 0x323   :  { %v3540_v40 = vadd.f32 %v3538_v57, %v3500_v35  ;;  %v3508_v39 = vadd.f32 %v3813_v47, %v3500_v35 }
 0x325   :  { %v3542_v41 = vsel %vm3541_vm5, %v3540_v40, -inf  ;;  %v3509_v7 = vmax.f32 %v3508_v39, 0.0 }
 0x326   :  { %3543 = vmax.xlane.f32.xlu0 %v3542_v41 }
 0x327   :  { %v3517_v27 = vmul.f32 %v3814_v29, %v3509_v7 }
 0x329   :  { %v3519_v49 = vsel %vm3518_vm6, %v3517_v27, 0.0 }
 0x3b3   :  { %v3544_v42 = vpop.xlane.xlu0 %3543 }
 0x3b4   :  { %v3545_v5 = vsub.f32 %v3540_v40, %v3544_v42 }
 0x3b6   :  { %v3546_v44 = vmul.f32 1.442695, %v3545_v5 }
 0x3b8   :  { %4737 = vpow2.f32 %v3546_v44 }
 0x3c2   :  { %v4738_v45 = vpop.eup %4737 }
 0x3c3   :  { %3549 = vrot.lane.b32.xlu1 %v4738_v45, %s4748_s9 }
 0x3e7   :  { %3520 = vadd.xlane.f32.xlu1 %v3519_v49 }
 0x435   :  { %v3550_v48 = vpop.permute.xlu1 %3549 }
 0x436   :  { %v3553_v52 = vsel %vm3552_vm7, %v3550_v48, 0.0 }
 0x437   :  { %3554 = vadd.xlane.f32.xlu0 %v3553_v52 }
 0x474   :  { %v3521_v54 = vpop.xlane.xlu1 %3520 }
 0x475   :  { %v3529_v56 = vadd.f32 %v3815_v53, %v3521_v54 }
 0x477   :  { %4739 = vtanh.f32 %v3529_v56 }
 0x481   :  { %v4740_v25 = vpop.eup %4739 }
 0x482   :  { %3563 = vrot.lane.b32.xlu1 %v4740_v25, %s4749_s4 }
 0x4c4   :  { %v3555_v23 = vpop.xlane.xlu0 %3554 }
 0x4c5   :  { %4741 = vrcp.f32 %v3555_v23 }
 0x4cf   :  { %v4742_v61 = vpop.eup %4741 }
 0x4d0   :  { %v3557_v0 = vmul.f32 %v4742_v61, %v4738_v45 }
 0x4d2   :  { %3559 = vrot.lane.b32.xlu0 %v3557_v0, %s4748_s9 }
 0x4f4   :  { %v3564_v58 = vpop.permute.xlu1 %3563 }
 0x544   :  { %v3560_v59 = vpop.permute.xlu0 %3559 }
 0x545   :  { %v3566_v60 = vsel %vm3552_vm7, %v3560_v59, %v3564_v58 }
 0x546   :  { %3568 = vst.msk [vmem:[%s5836_s8] sm:$0xff] %vm3567_vm8, %v3566_v60 }

</bundles_post_ra>
